<compile_context>
chip_gen: v7x
topology: tpu7x:2x2x1
jax: 0.10.0
libtpu: 0.0.40
codegen_flags: <defaults>
</compile_context>

<pallas_src>
import jax
import jax.numpy as jnp
from jax.experimental import pallas as pl
from jax.experimental.pallas import tpu as pltpu


_SUBLANE = 8


def _round_up(x, m):
    return pl.cdiv(x, m) * m


def _patch_embed_kernel(x_ref, w_ref, o_ref):
    # x_ref: (tile_s, K) native dtype; w_ref: (K, H) compute dtype (bf16);
    # o_ref: (tile_s, H) out dtype.  Cast x in-register right before the dot:
    # the VPU has huge slack here, and reading x at its native width keeps HBM
    # traffic minimal for f32 callers.
    x = x_ref[...].astype(w_ref.dtype)
    o_ref[...] = jnp.dot(
        x, w_ref[...], preferred_element_type=jnp.float32
    ).astype(o_ref.dtype)


def _default_vmem_budget_bytes():
    # Scale the pipeline-buffer budget with physical VMEM (64 MiB/TC on v7x,
    # 128 MiB on v5e/v6e) but cap it so Mosaic keeps internal headroom.
    cap = 64 * 1024 * 1024
    try:
        cap = getattr(pltpu.get_tpu_info(), "vmem_capacity_bytes", cap)
    except Exception:
        pass
    return min(int(cap * 0.4), 32 * 1024 * 1024)


def _choose_tile_s(seqlen, K, hidden, x_bytes, out_bytes, weight_bytes,
                   vmem_budget_bytes):
    # Footprint: double-buffered x tile + double-buffered out tile +
    # single-buffered resident weight (pl.Buffered(1) on the weight spec).
    row_bytes = K * x_bytes + hidden * out_bytes
    tile = 8192
    while tile > 512 and (2 * tile * row_bytes + weight_bytes) > vmem_budget_bytes:
        tile //= 2
    # Megacore / pipelining: for long sequences prefer >= 4 grid steps
    # (>= 2 per TensorCore on v7x) so DMAs are hidden and both cores get work,
    # while never dropping below 512 rows (small tiles sit far below roofline).
    min_steps = 4
    if seqlen >= min_steps * 512:
        tile = min(tile, _round_up(pl.cdiv(seqlen, min_steps), _SUBLANE))
    tile = max(tile, 512)
    tile = min(tile, _round_up(seqlen, _SUBLANE))
    return max(_SUBLANE, _round_up(tile, _SUBLANE))


def patch_embed_forward(x, w_t, *, tile_s=None, out_dtype=jnp.bfloat16,
                        vmem_budget_bytes=None):
    """x: (seqlen, K) any float dtype; w_t: (K, hidden) pre-cast conv weight.

    Returns (seqlen, hidden) in `out_dtype`.
    """
    seqlen, K = x.shape
    Kw, hidden = w_t.shape
    assert K == Kw, (K, Kw)

    x_bytes = jnp.dtype(x.dtype).itemsize
    w_bytes = jnp.dtype(w_t.dtype).itemsize
    out_bytes = jnp.dtype(out_dtype).itemsize
    weight_bytes = K * hidden * w_bytes  # single-buffered in VMEM

    if vmem_budget_bytes is None:
        vmem_budget_bytes = _default_vmem_budget_bytes()

    if tile_s is None:
        tile_s = _choose_tile_s(seqlen, K, hidden, x_bytes, out_bytes,
                                weight_bytes, vmem_budget_bytes)
    else:
        tile_s = max(512, tile_s)  # <512-row tiles waste the per-step overhead
    tile_s = min(tile_s, _round_up(seqlen, _SUBLANE))
    tile_s = max(_SUBLANE, _round_up(tile_s, _SUBLANE))

    grid = (pl.cdiv(seqlen, tile_s),)

    # Explicit scoped-VMEM limit = real footprint + headroom.  v5e defaults to
    # only 16 MiB scoped; v7x has 64 MiB physical per TC, so stay well below.
    footprint = 2 * tile_s * (K * x_bytes + hidden * out_bytes) + weight_bytes
    vmem_limit = min(max(int(footprint * 1.25) + 4 * 1024 * 1024,
                         16 * 1024 * 1024),
                     48 * 1024 * 1024)

    cost = pl.CostEstimate(
        flops=2 * seqlen * K * hidden,
        bytes_accessed=(seqlen * K * x_bytes
                        + weight_bytes
                        + seqlen * hidden * out_bytes),
        transcendentals=0,
    )

    return pl.pallas_call(
        _patch_embed_kernel,
        out_shape=jax.ShapeDtypeStruct((seqlen, hidden), out_dtype),
        grid_spec=pltpu.PrefetchScalarGridSpec(
            num_scalar_prefetch=0,
            grid=grid,
            in_specs=[
                pl.BlockSpec((tile_s, K), lambda i: (i, 0)),
                # Constant index_map + single pipeline buffer: the weight is
                # DMA'd once per core and stays resident for the whole grid.
                pl.BlockSpec((K, hidden), lambda i: (0, 0),
                             pipeline_mode=pl.Buffered(buffer_count=1)),
            ],
            out_specs=pl.BlockSpec((tile_s, hidden), lambda i: (i, 0)),
        ),
        compiler_params=pltpu.CompilerParams(
            dimension_semantics=("parallel",),
            vmem_limit_bytes=vmem_limit,
        ),
        cost_estimate=cost,
    )(x, w_t)


class PatchEmbedPallas:
    """Mirror of the PyTorch PatchEmbed (Conv3d, kernel==stride, no bias)."""

    def __init__(self, patch_size=14, temporal_patch_size=2, in_chans=3,
                 hidden_size=1152, key=None, compute_dtype=jnp.bfloat16,
                 out_dtype=jnp.bfloat16):
        self.patch_size = patch_size
        self.temporal_patch_size = temporal_patch_size
        self.in_chans = in_chans
        self.hidden_size = hidden_size
        self.out_dtype = out_dtype
        K = in_chans * temporal_patch_size * patch_size * patch_size
        if key is None:
            key = jax.random.PRNGKey(0)
        # Conv3d weight (hidden, in_chans, T, P, P), no bias. Deterministic init.
        w5d = jax.random.normal(
            key,
            (hidden_size, in_chans, temporal_patch_size, patch_size, patch_size),
            dtype=jnp.float32) * (1.0 / K) ** 0.5
        # (hidden, K) in NCDHW flatten order — matches the PyTorch module view.
        self.weight = w5d.reshape(hidden_size, K)
        # Pre-transposed + pre-cast ONCE to the MXU compute dtype: (K, hidden).
        self.weight_t = jnp.transpose(self.weight).astype(compute_dtype)

    def __call__(self, x, *, tile_s=None, out_dtype=None):
        # x: (seqlen, in_chans*T*P*P) — same input as the PyTorch module.
        # x is passed through in its native dtype; the kernel casts in-register.
        seqlen = x.shape[0]
        x_flat = x.reshape(seqlen, -1)
        return patch_embed_forward(
            x_flat, self.weight_t, tile_s=tile_s,
            out_dtype=self.out_dtype if out_dtype is None else out_dtype)


if __name__ == "__main__":
    key = jax.random.PRNGKey(0)
    k_x, k_w = jax.random.split(key)

    patch_size = 8
    temporal_patch_size = 2
    in_chans = 3
    hidden_size = 128
    # Ragged seqlen (not a tile multiple): exercises the masked partial last
    # block AND a multi-step (>=4) pipelined grid with >=512-row tiles.
    seqlen = 2200
    K = in_chans * temporal_patch_size * patch_size * patch_size  # 384

    module = PatchEmbedPallas(
        patch_size=patch_size,
        temporal_patch_size=temporal_patch_size,
        in_chans=in_chans,
        hidden_size=hidden_size,
        key=k_w,
    )

    # f32 caller: kernel reads f32 straight from HBM and casts in-register.
    x = jax.random.normal(k_x, (seqlen, K), dtype=jnp.float32)

    out = module(x)  # default tiling (tile_s=None): budget-sized, >=4 steps
    out = jax.block_until_ready(out)

    assert out.shape == (seqlen, hidden_size)
    assert out.dtype == jnp.bfloat16

    # Reference: conv with kernel==stride collapses to a plain matmul on the
    # same bf16-rounded operands with f32 accumulation.
    x_bf = x.astype(jnp.bfloat16).astype(jnp.float32)
    w_bf = module.weight_t.astype(jnp.float32)           # (K, hidden)
    ref = jnp.dot(x_bf, w_bf, precision=jax.lax.Precision.HIGHEST)

    out_f32 = out.astype(jnp.float32)
    max_err = float(jnp.max(jnp.abs(out_f32 - ref)))
    assert jnp.allclose(out_f32, ref, atol=6e-2, rtol=6e-2), max_err

    print("KERNEL_OK")
</pallas_src>

<mosaic_0001>
module attributes {stable_mosaic.version = 11 : i64} {
  func.func @_patch_embed_kernel(%arg0: i32, %arg1: memref<552x384xf32, #tpu.memory_space<vmem>>, %arg2: memref<384x128xbf16, #tpu.memory_space<vmem>>, %arg3: memref<552x128xbf16, #tpu.memory_space<vmem>>) attributes {dimension_semantics = [#tpu.dimension_semantics<parallel>], iteration_bounds = array<i64: 4>, scalar_prefetch = 0 : i64, scratch_operands = 0 : i64, tpu.core_type = #tpu.core_type<tc>, window_params = [{transform_indices = @transform_0, window_bounds = array<i64: 552, 384>}, {pipeline_mode = #tpu.pipeline_mode<synchronous>, transform_indices = @transform_1, window_bounds = array<i64: 384, 128>}, {transform_indices = @transform_2, window_bounds = array<i64: 552, 128>}]} {
    %c0 = arith.constant 0 : index
    %c0_0 = arith.constant 0 : index
    %0 = vector.load %arg1[%c0, %c0_0] : memref<552x384xf32, #tpu.memory_space<vmem>>, vector<552x384xf32>
    %1 = arith.truncf %0 : vector<552x384xf32> to vector<552x384xbf16>
    %c0_1 = arith.constant 0 : index
    %c0_2 = arith.constant 0 : index
    %2 = vector.load %arg2[%c0_1, %c0_2] : memref<384x128xbf16, #tpu.memory_space<vmem>>, vector<384x128xbf16>
    %cst = arith.constant dense<0.000000e+00> : vector<552x128xf32>
    %3 = tpu.matmul %1, %2, %cst {dimension_numbers = #tpu.dot_dimension_numbers<[1], [0], [0], [1], [0, 0, 1, 1], [], []>} : vector<552x384xbf16>, vector<384x128xbf16>, vector<552x128xf32> -> vector<552x128xf32>
    %4 = arith.truncf %3 : vector<552x128xf32> to vector<552x128xbf16>
    %c0_3 = arith.constant 0 : index
    %c0_4 = arith.constant 0 : index
    %5 = vector.load %arg3[%c0_3, %c0_4] : memref<552x128xbf16, #tpu.memory_space<vmem>>, vector<552x128xbf16>
    tpu.vector_store %arg3[%c0_3, %c0_4], %4 {strides = array<i32>} : memref<552x128xbf16, #tpu.memory_space<vmem>>, vector<552x128xbf16>,
    return
  }
  func.func @transform_0(%arg0: i32) -> (i32, i32) {
    %c0_i32 = arith.constant 0 : i32
    %c0_i32_0 = arith.constant 0 : i32
    return %arg0, %c0_i32 : i32, i32
  }
  func.func @transform_1(%arg0: i32) -> (i32, i32) {
    %c0_i32 = arith.constant 0 : i32
    %c0_i32_0 = arith.constant 0 : i32
    %c0_i32_1 = arith.constant 0 : i32
    return %c0_i32, %c0_i32_0 : i32, i32
  }
  func.func @transform_2(%arg0: i32) -> (i32, i32) {
    %c0_i32 = arith.constant 0 : i32
    %c0_i32_0 = arith.constant 0 : i32
    return %arg0, %c0_i32 : i32, i32
  }
}

</mosaic_0001>

<bundles_post_ra>
// kernel: tpu_custom_call.1
= control target key start
LH: loop header
LB: loop body
LE: loop exit
PB: predicated region body
PF: predicated region fallthrough
CT: control target
= control target key end

     0   :  { %7 = vsyncpa [#allocation3], 0  ;;  %s3256_s0 = inlined_call_operand.hbm [shape: f32[2200,384], index: 0, kind: input, shape index: {}]   ;;  %s3257_s1 = inlined_call_operand.hbm [shape: bf16[384,128], index: 1, kind: input, shape index: {}]   ;;  %s3258_s2 = inlined_call_operand.hbm [shape: bf16[2200,128], index: 2, kind: output, shape index: {}]  }
   0x1   :  { %9 = vsyncpa [#allocation3 + $0x1], 0 }
   0x2   :  { %10 = vsyncpa [#allocation6], 0 }
   0x3   :  { %11 = vsyncpa [#allocation4], 0 }
   0x4   :  { %13 = vsyncpa [#allocation4 + $0x1], 0  ;;  %s2669_s9 = smov 0   ;;  %s2671_s10 = smov 0  }
   0x5   :  { %s2673_s11 = smov 0   ;;  %s2675_s12 = smov 0  }
   0x6 LB: > { %s2690_s13 = sadd.s32 4294967295, %s2640_s12   ;;  %s1774_s14 = sadd.s32 4294967294, %s2640_s12   ;;  %s2640_s12 = sphi %s2675_s12, %s3278_s12   ;;  %s2636_s11 = sphi %s2673_s11, %s3277_s11   ;;  %s2632_s10 = sphi %s2671_s10, %s3276_s10   ;;  %s2628_s9 = sphi %s2669_s9, %s3275_s9  }
   0x7   : > { %s2694_s15 = sadd.s32 1, %s2640_s12   ;;  %s26_s16 = sadd.s32 1, %s2636_s11 }
   0x8   : > { %s23_s17 = ssub.s32 %s2640_s12, %s2694_s15  ;;  %p33_p0 = scmp.ne.s32.totalorder %s2636_s11, %s2632_s10 }
   0x9   : > { %p24_p1 = scmp.eq.s32.totalorder %s23_s17, 0  ;;  %p34_p2 = scmp.eq.s32.totalorder %s2640_s12, 0 }
   0xa   : > { %p39_p3 = scmp.ne.s32.totalorder %s2632_s10, %s2628_s9  ;;  %p3259_p4 = scmp.eq.s32.totalorder %s2690_s13, 0 }
   0xb   : > { %s2706_s18 = scalar_select %p24_p1, %s2636_s11, %s26_s16  }
   0xc   : > { %p2708_p5 = por %p34_p2, %p33_p0  ;;  %p2714_p6 = por %p3259_p4, %p39_p3 }
   0xd   : > { %p84_p7 = scmp.eq.s32.totalorder %s2690_s13, 3  ;;  %p90_p8 = scmp.eq.s32.totalorder %s1774_s14, 3 }
   0xe   : > { %s3262_s19 = scalar_select %p2708_p5, 1, 0 }
   0xf   : > { %s3263_s20 = scalar_select %p2714_p6, 1, 0 }
  0x10   : > { %p1775_p9 = scmp.ge.s32.totalorder %s2640_s12, 1  ;;  %p97_p10 = scmp.lt.s32.totalorder %s2640_s12, 5 }
  0x11   : > { %p2721_p11 = por %p84_p7, %p33_p0  ;;  %p2725_p12 = por %p90_p8, %p39_p3 }
  0x12   : > { %p2729_p13 = pnand %p1775_p9, %p97_p10  ;;  %s2642_s24 = smov [#allocation5]  }
  0x13   : > { %s3264_s21 = scalar_select %p2721_p11, 1, 0 }
  0x14   : > { %s3265_s22 = scalar_select %p2725_p12, 1, 0 }
  0x15   : > { %s3266_s23 = scalar_select %p2729_p13, 1, 0 }
  0x16   : > { %p2436_p1 = pneg %p2729_p13  ;;  %s109_s25 = sshll.u32 %s2642_s24, 4  ;;  %s110_s25 = int_to_ptr.vmem [resolvable:$true] %s109_s25 }
  0x17   : > { %s2514_s29 = scalar_lea.hbm %s3257_s1, 3072 }
  0x18   : > { %p2737_p2 = pnand %p2436_p1, %p3259_p4  ;;  %p2515_p0 = scmp.ne.s32.totalorder %s3257_s1, %s2514_s29 }
  0x19   : > { %p2521_p9 = scmp.lt.u32.totalorder %s2514_s29, %s3257_s1 }
  0x1a   : > { %p2516_p3 = pneg %p2737_p2 }
  0x1c   : > { %p2517_p7 = pnand %p2516_p3, %p2515_p0 }
  0x1e   : > { %p2518_p8 = pneg %p2517_p7 }
  0x20   : > { %p2523_p10 = pnand %p2521_p9, %p2518_p8 }
  0x22   : > { %2526 = shalt.err (!%p2523_p10)
}
  0x23   : > { %s2527_s6 = scalar_lea.vmem %s110_s25, 3072  ;;  %p2535_p11 = scmp.lt.s32.totalorder %s110_s25, %s110_s25 }
  0x24   : > { %p2528_p1 = scmp.ne.s32.totalorder %s110_s25, %s2527_s6  ;;  %p2536_p6 = scmp.lt.s32.totalorder %s2527_s6, %s2527_s6 }
  0x26   : > { %p2530_p4 = pnand %p2528_p1, %p2516_p3  ;;  %p2537_p13 = por %p2536_p6, %p2535_p11 }
  0x28   : > { %p2531_p12 = pneg %p2530_p4 }
  0x2a   : > { %p2538_p5 = pnand %p2537_p13, %p2531_p12 }
  0x2c   : > { %2541 = shalt.err (!%p2538_p5)
}
  0x2d   : > { %s2643_s7 = smov 64   ;;  %s2644_s8 = smov 4  }
  0x2e   : > { %2439 = dma.hbm_to_vmem [thread:$0]  (!%p2737_p2), %s3257_s1, 3072, %s110_s25, [#allocation6], %s2643_s7, %s2643_s7, %s2644_s8  }
  0x2f   : > { %p1777_p0 = scmp.ge.s32.totalorder %s2640_s12, 4 }
  0x30   : > { %p3268_p7 = scmp.ne.s32.totalorder (!%p1777_p0), %s3262_s19, 0 }
  0x31   : > { %119 = sbr.rel (%p1777_p0) target bundleno = 92 (0x5c), region = 20 }
  0x38   : > { %122 = sbr.rel (!%p3268_p7) target bundleno = 92 (0x5c), region = 24  ;;  %s123_s17 = sand.u32 (%p3268_p7), 1, %s2636_s11  }
  0x39   : > { %s128_s24 = smul.u32 (%p3268_p7), 69, %s2640_s12  ;;  %s2765_s30 = scalar_lea.sflag (%p3268_p7), [#allocation3], %s123_s17 }
  0x3a   : > { %s2426_s27 = smul.u32 (%p3268_p7), 1656, %s123_s17 }
  0x3b   : > { %s129_s28 = ssub.s32 (%p3268_p7), 275, %s128_s24 }
  0x3c   : > { %p130_p4 = scmp.lt.s32.totalorder (%p3268_p7), %s129_s28, 69  ;;  %s127_s25 = scalar_lea.vmem (%p3268_p7), [#allocation2], %s2426_s27 }
  0x3f   : > { %s3280_s28 = smov (!%p130_p4, %s129_s28), 69 }
  0x40   : > { %s2762_s29 = smul.u32 384, %s3280_s28 }
  0x42   : > { %s135_s26 = ssub.s32 26496, %s2762_s29 }
  0x43   : > { %136 = vsyncadd %s2765_s30, %s135_s26  ;;  %p1780_p5 = scmp.ne.s32.totalorder %s2762_s29, 0  ;;  %s2445_s19 = smul.u32 26496, %s2640_s12 }
  0x44   : > { %s142_s3 = sshll.u32 %s127_s25, 4  ;;  %s2546_s16 = scalar_lea.hbm %s3256_s0, 105600  ;;  %s2775_s3 = int_to_ptr.vmem [resolvable:$true] %s142_s3 }
  0x45   : > { %s2773_s6 = scalar_lea.hbm %s3256_s0, %s2445_s19 }
  0x46   : > { %s2542_s7 = scalar_lea.hbm %s2773_s6, %s2762_s29  ;;  %p2547_p13 = scmp.lt.u32.totalorder %s2773_s6, %s3256_s0 }
  0x47   : > { %p2543_p6 = scmp.ne.s32.totalorder %s2773_s6, %s2542_s7  ;;  %p2548_p2 = scmp.lt.u32.totalorder %s2546_s16, %s2542_s7 }
  0x48   : > { %p2550_p8 = scmp.lt.u32.totalorder %s2542_s7, %s2773_s6 }
  0x49   : > { %p2544_p11 = pnand %p2543_p6, %p1780_p5  ;;  %p2549_p3 = por %p2548_p2, %p2547_p13 }
  0x4b   : > { %p2545_p12 = pneg %p2544_p11  ;;  %p2551_p9 = por %p2550_p8, %p2549_p3 }
  0x4d   : > { %p2552_p10 = pnand %p2551_p9, %p2545_p12 }
  0x4f   : > { %2555 = shalt.err (!%p2552_p10)
}
  0x50   : > { %s2556_s27 = scalar_lea.vmem %s2775_s3, %s2762_s29  ;;  %s2645_s28 = smov [#allocation2]  }
  0x51   : > { %p2557_p1 = scmp.ne.s32.totalorder %s2775_s3, %s2556_s27  ;;  %s2560_s26 = sshll.u32 %s2645_s28, 4  ;;  %s2561_s26 = int_to_ptr.vmem [resolvable:$false] %s2560_s26 }
  0x52   : > { %s2562_s25 = scalar_lea.vmem %s2561_s26, 52992  ;;  %p2563_p4 = scmp.lt.s32.totalorder %s2775_s3, %s2561_s26 }
  0x53   : > { %p2558_p0 = pnand %p2557_p1, %p1780_p5  ;;  %p2564_p6 = scmp.lt.s32.totalorder %s2562_s25, %s2556_s27 }
  0x55   : > { %p2559_p7 = pneg %p2558_p0  ;;  %p2565_p11 = por %p2564_p6, %p2563_p4 }
  0x57   : > { %p2566_p13 = pnand %p2565_p11, %p2559_p7 }
  0x59   : > { %2569 = shalt.err (!%p2566_p13)
}
  0x5a   : > { %s2646_s19 = smov 384   ;;  %s2647_s4 = smov 24  }
  0x5b   : > { %148 = dma.hbm_to_vmem [thread:$0]  (%p1780_p5), %s2773_s6, %s2762_s29, %s2775_s3, %s2765_s30, %s2646_s19, %s2646_s19, %s2647_s4  }
  0x5c PF: > { %p3269_p12 = scmp.ne.s32.totalorder %s3266_s23, 0 }
  0x5d   : > { %s2805_s5 = sand.u32 (!%p3269_p12), 1, %s2632_s10   ;;  %p3270_p2 = scmp.ne.s32.totalorder (!%p3269_p12), %s3263_s20, 0 }
  0x5e   : > { %154 = sbr.rel (%p3269_p12) target bundleno = 687 (0x2af), region = 28  ;;  %s157_s8 = scalar_lea.sflag (!%p3269_p12), [#allocation3], %s2805_s5 }
  0x5f   : > { %s2428_s7 = smul.u32 (!%p3269_p12), 1656, %s2805_s5 }
  0x61   : > { %s2809_s14 = scalar_lea.vmem (!%p3269_p12), [#allocation2], %s2428_s7 }
  0x65   : > { %2615 = dma.done.wait (%p3270_p2), %s157_s8, 26496  }
  0x66   : > { %2617 = vsyncadd (%p3270_p2), %s157_s8, 4294940800  ;;  %p3271_p5 = scmp.eq.s32.totalorder %s2690_s13, 0 }
  0x68   : > { %2619 = dma.done.wait (%p3271_p5), [#allocation6], 3072   ;;  %p3272_p3 = pmov %p3271_p5 }
  0x69   : > { %v2648_v0 = vmov 0   ;;  %v2649_v1 = vmov 0.0   ;;  %vm2650_vm0 = vmmov 0   ;;  %v2490_v2 = vld [vmem:[#allocation5] sm:$0xff]   ;;  %v2491_v3 = vld [vmem:[#allocation5 + $0x8] sm:$0xff]   ;;  %v2492_v4 = vld [vmem:[#allocation5 + $0x10] sm:$0xff]  }
  0x6a   : > { %2621 = vsyncadd (%p3272_p3), [#allocation6], 4294964224  ;;  %701 = vmatprep.subr.bf16.mxu1 %v2648_v0  ;;  %2201 = vmatprep.subr.bf16.mxu0 %v2649_v1  ;;  %v2498_v5 = vld [vmem:[#allocation5 + $0x80] sm:$0xff]   ;;  %v2493_v6 = vld [vmem:[#allocation5 + $0x18] sm:$0xff]   ;;  %s2429_s20 = smul.u32 276, %s2805_s5  ;;  %s1672_s29 = scalar_lea.sflag [#allocation4], %s2805_s5 }
  0x6b   : > { %2217 = vmatprep.mubr.msk.bf16.mxu0 %vm2650_vm0, %v2649_v1  ;;  %702 = vmatpush1.bf16.msra.mxu1 %v2490_v2  ;;  %v2500_v7 = vld [vmem:[#allocation5 + $0x88] sm:$0xff]   ;;  %v2494_v8 = vld [vmem:[#allocation5 + $0x20] sm:$0xff]   ;;  %v2502_v9 = vld [vmem:[#allocation5 + $0x90] sm:$0xff]   ;;  %p3273_p8 = scmp.ne.s32.totalorder %s3264_s21, 0 }
  0x6c   : > { %703 = vmatprep.subr.bf16.mxu1 %v2648_v0  ;;  %2202 = vmatpush3.bf16.msra.mxu0 %v2498_v5  ;;  %v2495_v10 = vld [vmem:[#allocation5 + $0x28] sm:$0xff]   ;;  %v2504_v11 = vld [vmem:[#allocation5 + $0x98] sm:$0xff]   ;;  %v2496_v12 = vld [vmem:[#allocation5 + $0x30] sm:$0xff]   ;;  %s3100_s23 = scalar_lea.vmem [#allocation7], %s2429_s20  ;;  %s1679_s30 = smul.u32 (%p3273_p8), 69, %s2690_s13 }
  0x6d   : > { %2203 = vmatprep.subr.bf16.mxu0 %v2649_v1  ;;  %v2506_v13 = vld [vmem:[#allocation5 + $0xa0] sm:$0xff]   ;;  %v198_v14 = vld [vmem:[%s2809_s14 + $0x8] sm:$0xff]  ;;  %v201_v15 = vld [vmem:[%s2809_s14 + $0x20] sm:$0xff] }
  0x6e   : > { %v2497_v16 = vld [vmem:[#allocation5 + $0x38] sm:$0xff]   ;;  %v2508_v17 = vld [vmem:[#allocation5 + $0xa8] sm:$0xff]   ;;  %v405_v18 = vpack.c.bf16 %v201_v15, %v198_v14  ;;  %v2499_v19 = vld [vmem:[#allocation5 + $0x40] sm:$0xff]   ;;  %s1680_s3 = ssub.s32 (%p3273_p8), 275, %s1679_s30 }
  0x6f   : > { %704 = vmatpush1.bf16.msra.mxu1 %v2491_v3  ;;  %v2510_v20 = vld [vmem:[#allocation5 + $0xb0] sm:$0xff]   ;;  %v2501_v21 = vld [vmem:[#allocation5 + $0x48] sm:$0xff]   ;;  %v2512_v22 = vld [vmem:[#allocation5 + $0xb8] sm:$0xff]   ;;  %p1681_p9 = scmp.lt.s32.totalorder (%p3273_p8), %s1680_s3, 69 }
  0x70   : > { %705 = vmatprep.subr.bf16.mxu1 %v2648_v0  ;;  %2204 = vmatpush3.bf16.msra.mxu0 %v2500_v7  ;;  %v199_v23 = vld [vmem:[%s2809_s14 + $0x10] sm:$0xff]  ;;  %v202_v24 = vld [vmem:[%s2809_s14 + $0x28] sm:$0xff]  ;;  %v205_v28 = vld [vmem:[%s2809_s14 + $0x40] sm:$0xff] }
  0x71   : > { %2205 = vmatprep.subr.bf16.mxu0 %v2649_v1  ;;  %733 = vmatprep.mubr.bf16.mxu1 %v405_v18  ;;  %v406_v25 = vpack.c.bf16 %v202_v24, %v199_v23  ;;  %v2503_v26 = vld [vmem:[#allocation5 + $0x50] sm:$0xff]   ;;  %v2505_v27 = vld [vmem:[#allocation5 + $0x58] sm:$0xff]   ;;  %v208_v29 = vld [vmem:[%s2809_s14 + $0x58] sm:$0xff] }
  0x72   : > { %v409_v30 = vpack.c.bf16 %v208_v29, %v205_v28  ;;  %v2507_v31 = vld [vmem:[#allocation5 + $0x60] sm:$0xff]   ;;  %v2509_v32 = vld [vmem:[#allocation5 + $0x68] sm:$0xff]   ;;  %v214_v34 = vld [vmem:[%s2809_s14 + $0x88] sm:$0xff] }
  0x73   : > { %706 = vmatpush1.bf16.msra.mxu1 %v2492_v4  ;;  %v211_v33 = vld [vmem:[%s2809_s14 + $0x70] sm:$0xff]  ;;  %v2511_v36 = vld [vmem:[#allocation5 + $0x70] sm:$0xff]   ;;  %v200_v39 = vld [vmem:[%s2809_s14 + $0x18] sm:$0xff] }
  0x74   : > { %707 = vmatprep.subr.bf16.mxu1 %v2648_v0  ;;  %2206 = vmatpush3.bf16.msra.mxu0 %v2502_v9  ;;  %v412_v35 = vpack.c.bf16 %v214_v34, %v211_v33  ;;  %v2513_v37 = vld [vmem:[#allocation5 + $0x78] sm:$0xff]   ;;  %v197_v38 = vld [vmem:[%s2809_s14] sm:$0xff]  ;;  %v220_v41 = vld [vmem:[%s2809_s14 + $0xb8] sm:$0xff] }
  0x75   : > { %2207 = vmatprep.subr.bf16.mxu0 %v2649_v1  ;;  %v217_v40 = vld [vmem:[%s2809_s14 + $0xa0] sm:$0xff]  ;;  %v204_v42 = vld [vmem:[%s2809_s14 + $0x38] sm:$0xff]  ;;  %v207_v43 = vld [vmem:[%s2809_s14 + $0x50] sm:$0xff]  ;;  %v404_v44 = vpack.c.bf16 %v200_v39, %v197_v38 }
  0x76   : > { %v415_v45 = vpack.c.bf16 %v220_v41, %v217_v40  ;;  %v408_v46 = vpack.c.bf16 %v207_v43, %v204_v42  ;;  %v203_v47 = vld [vmem:[%s2809_s14 + $0x30] sm:$0xff]  ;;  %v206_v48 = vld [vmem:[%s2809_s14 + $0x48] sm:$0xff]  ;;  %v213_v52 = vld [vmem:[%s2809_s14 + $0x80] sm:$0xff] }
  0x77   : > { %708 = vmatpush1.bf16.msra.mxu1 %v2493_v6  ;;  %v223_v49 = vld [vmem:[%s2809_s14 + $0xd0] sm:$0xff]  ;;  %v226_v50 = vld [vmem:[%s2809_s14 + $0xe8] sm:$0xff]  ;;  %v407_v53 = vpack.c.bf16 %v206_v48, %v203_v47  ;;  %v209_v56 = vld [vmem:[%s2809_s14 + $0x60] sm:$0xff] }
  0x78   : > { %709 = vmatprep.subr.bf16.mxu1 %v2648_v0  ;;  %2208 = vmatpush3.bf16.msra.mxu0 %v2504_v11  ;;  %v210_v51 = vld [vmem:[%s2809_s14 + $0x68] sm:$0xff]  ;;  %v418_v54 = vpack.c.bf16 %v226_v50, %v223_v49  ;;  %v212_v57 = vld [vmem:[%s2809_s14 + $0x78] sm:$0xff]  ;;  %v229_v58 = vld [vmem:[%s2809_s14 + $0x100] sm:$0xff] }
  0x79   : > { %2209 = vmatprep.subr.bf16.mxu0 %v2649_v1  ;;  %v411_v55 = vpack.c.bf16 %v213_v52, %v210_v51  ;;  %v232_v59 = vld [vmem:[%s2809_s14 + $0x118] sm:$0xff]  ;;  %v219_v61 = vld [vmem:[%s2809_s14 + $0xb0] sm:$0xff]  ;;  %v410_v62 = vpack.c.bf16 %v212_v57, %v209_v56  ;;  %v218_v3 = vld [vmem:[%s2809_s14 + $0xa8] sm:$0xff] }
  0x7a   : > { %v216_v60 = vld [vmem:[%s2809_s14 + $0x98] sm:$0xff]  ;;  %v421_v63 = vpack.c.bf16 %v232_v59, %v229_v58  ;;  %v215_v2 = vld [vmem:[%s2809_s14 + $0x90] sm:$0xff]  ;;  %v238_v5 = vld [vmem:[%s2809_s14 + $0x148] sm:$0xff] }
  0x7b   : > { %710 = vmatpush1.bf16.msra.mxu1 %v2494_v8  ;;  %v235_v4 = vld [vmem:[%s2809_s14 + $0x130] sm:$0xff]  ;;  %v222_v6 = vld [vmem:[%s2809_s14 + $0xc8] sm:$0xff]  ;;  %v225_v7 = vld [vmem:[%s2809_s14 + $0xe0] sm:$0xff]  ;;  %v413_v8 = vpack.c.bf16 %v218_v3, %v215_v2 }
  0x7c   : > { %711 = vmatprep.subr.bf16.mxu1 %v2648_v0  ;;  %2210 = vmatpush3.bf16.msra.mxu0 %v2506_v13  ;;  %v424_v9 = vpack.c.bf16 %v238_v5, %v235_v4  ;;  %v221_v11 = vld [vmem:[%s2809_s14 + $0xc0] sm:$0xff]  ;;  %v244_v14 = vld [vmem:[%s2809_s14 + $0x178] sm:$0xff]  ;;  %v250_v23 = vld [vmem:[%s2809_s14 + $0x1a8] sm:$0xff] }
  0x7d   : > { %2211 = vmatprep.subr.bf16.mxu0 %v2649_v1  ;;  %v241_v13 = vld [vmem:[%s2809_s14 + $0x160] sm:$0xff]  ;;  %v228_v15 = vld [vmem:[%s2809_s14 + $0xf8] sm:$0xff]  ;;  %v234_v24 = vld [vmem:[%s2809_s14 + $0x128] sm:$0xff] }
  0x7e   : > { %v427_v18 = vpack.c.bf16 %v244_v14, %v241_v13  ;;  %v233_v29 = vld [vmem:[%s2809_s14 + $0x120] sm:$0xff]  ;;  %v240_v33 = vld [vmem:[%s2809_s14 + $0x158] sm:$0xff]  ;;  %v243_v34 = vld [vmem:[%s2809_s14 + $0x170] sm:$0xff] }
  0x7f   : > { %712 = vmatpush1.bf16.msra.mxu1 %v2495_v10  ;;  %v417_v10 = vpack.c.bf16 %v225_v7, %v222_v6  ;;  %v239_v38 = vld [vmem:[%s2809_s14 + $0x150] sm:$0xff]  ;;  %v242_v39 = vld [vmem:[%s2809_s14 + $0x168] sm:$0xff]  ;;  %v249_v43 = vld [vmem:[%s2809_s14 + $0x1a0] sm:$0xff] }
  0x80   : > { %713 = vmatprep.subr.bf16.mxu1 %v2648_v0  ;;  %2212 = vmatpush3.bf16.msra.mxu0 %v2508_v17  ;;  %v259_v40 = vld [vmem:[%s2809_s14 + $0x1f0] sm:$0xff]  ;;  %v262_v41 = vld [vmem:[%s2809_s14 + $0x208] sm:$0xff]  ;;  %v245_v47 = vld [vmem:[%s2809_s14 + $0x180] sm:$0xff] }
  0x81   : > { %2213 = vmatprep.subr.bf16.mxu0 %v2649_v1  ;;  %v246_v42 = vld [vmem:[%s2809_s14 + $0x188] sm:$0xff]  ;;  %v248_v48 = vld [vmem:[%s2809_s14 + $0x198] sm:$0xff]  ;;  %v265_v49 = vld [vmem:[%s2809_s14 + $0x220] sm:$0xff] }
  0x82   : > { %v268_v50 = vld [vmem:[%s2809_s14 + $0x238] sm:$0xff]  ;;  %v255_v52 = vld [vmem:[%s2809_s14 + $0x1d0] sm:$0xff]  ;;  %v254_v57 = vld [vmem:[%s2809_s14 + $0x1c8] sm:$0xff] }
  0x83   : > { %714 = vmatpush1.bf16.msra.mxu1 %v2496_v12  ;;  %v224_v12 = vld [vmem:[%s2809_s14 + $0xd8] sm:$0xff]  ;;  %v251_v56 = vld [vmem:[%s2809_s14 + $0x1b0] sm:$0xff]  ;;  %v274_v59 = vld [vmem:[%s2809_s14 + $0x268] sm:$0xff] }
  0x84   : > { %715 = vmatprep.subr.bf16.mxu1 %v2648_v0  ;;  %2214 = vmatpush3.bf16.msra.mxu0 %v2510_v20  ;;  %v416_v17 = vpack.c.bf16 %v224_v12, %v221_v11  ;;  %v227_v20 = vld [vmem:[%s2809_s14 + $0xf0] sm:$0xff]  ;;  %v252_v51 = vld [vmem:[%s2809_s14 + $0x1b8] sm:$0xff]  ;;  %v257_v2 = vld [vmem:[%s2809_s14 + $0x1e0] sm:$0xff] }
  0x85   : > { %2215 = vmatprep.subr.bf16.mxu0 %v2649_v1  ;;  %v271_v58 = vld [vmem:[%s2809_s14 + $0x250] sm:$0xff]  ;;  %v260_v3 = vld [vmem:[%s2809_s14 + $0x1f8] sm:$0xff]  ;;  %v277_v4 = vld [vmem:[%s2809_s14 + $0x280] sm:$0xff] }
  0x86   : > { %v280_v5 = vld [vmem:[%s2809_s14 + $0x298] sm:$0xff]  ;;  %v267_v7 = vld [vmem:[%s2809_s14 + $0x230] sm:$0xff]  ;;  %v266_v12 = vld [vmem:[%s2809_s14 + $0x228] sm:$0xff] }
  0x87   : > { %716 = vmatpush1.bf16.msra.mxu1 %v2497_v16  ;;  %v231_v16 = vld [vmem:[%s2809_s14 + $0x110] sm:$0xff]  ;;  %v264_v6 = vld [vmem:[%s2809_s14 + $0x218] sm:$0xff]  ;;  %v286_v14 = vld [vmem:[%s2809_s14 + $0x2c8] sm:$0xff] }
  0x88   : > { %717 = vmatprep.subr.bf16.mxu1 %v2648_v0  ;;  %2216 = vmatpush3.bf16.msra.mxu0 %v2512_v22  ;;  %v247_v22 = vld [vmem:[%s2809_s14 + $0x190] sm:$0xff] }
  0x89   : > { %v263_v11 = vld [vmem:[%s2809_s14 + $0x210] sm:$0xff] }
  0x8a   : > { %v283_v13 = vld [vmem:[%s2809_s14 + $0x2b0] sm:$0xff] }
  0x8b   : > { %718 = vmatpush1.bf16.msra.mxu1 %v2499_v19  ;;  %2218 = vmatmul.mubr.bf16.vlgmr.msra.gmra.mrb[0].mxu0 %v406_v25  ;;  %v420_v19 = vpack.c.bf16 %v231_v16, %v228_v15  ;;  %v237_v25 = vld [vmem:[%s2809_s14 + $0x140] sm:$0xff]  ;;  %v270_v15 = vld [vmem:[%s2809_s14 + $0x248] sm:$0xff] }
  0x8c   : > { %719 = vmatprep.subr.bf16.mxu1 %v2648_v0  ;;  %2221 = vmatprep.mubr.msk.bf16.mxu0 %vm2650_vm0, %v2649_v1  ;;  %v423_v28 = vpack.c.bf16 %v237_v25, %v234_v24  ;;  %v273_v16 = vld [vmem:[%s2809_s14 + $0x260] sm:$0xff]  ;;  %v276_v24 = vld [vmem:[%s2809_s14 + $0x278] sm:$0xff]  ;;  %v279_v25 = vld [vmem:[%s2809_s14 + $0x290] sm:$0xff] }
  0x8f   : > { %720 = vmatpush1.bf16.msra.mxu1 %v2501_v21  ;;  %v230_v21 = vld [vmem:[%s2809_s14 + $0x108] sm:$0xff] }
  0x90   : > { %721 = vmatprep.subr.bf16.mxu1 %v2648_v0 }
  0x93   : > { %722 = vmatpush1.bf16.msra.mxu1 %v2503_v26  ;;  %2222 = vmatmul.mubr.bf16.gmra.mrb[4].mxu0 %v409_v30  ;;  %v419_v26 = vpack.c.bf16 %v230_v21, %v227_v20  ;;  %v236_v30 = vld [vmem:[%s2809_s14 + $0x138] sm:$0xff]  ;;  %v269_v20 = vld [vmem:[%s2809_s14 + $0x240] sm:$0xff] }
  0x94   : > { %723 = vmatprep.subr.bf16.mxu1 %v2648_v0  ;;  %2225 = vmatprep.mubr.msk.bf16.mxu0 %vm2650_vm0, %v2649_v1  ;;  %v272_v21 = vld [vmem:[%s2809_s14 + $0x258] sm:$0xff] }
  0x97   : > { %724 = vmatpush1.bf16.msra.mxu1 %v2505_v27  ;;  %v430_v27 = vpack.c.bf16 %v250_v23, %v247_v22  ;;  %v289_v22 = vld [vmem:[%s2809_s14 + $0x2e0] sm:$0xff]  ;;  %v292_v23 = vld [vmem:[%s2809_s14 + $0x2f8] sm:$0xff] }
  0x98   : > { %725 = vmatprep.subr.bf16.mxu1 %v2648_v0 }
  0x9b   : > { %726 = vmatpush1.bf16.msra.mxu1 %v2507_v31  ;;  %2226 = vmatmul.mubr.bf16.gmra.mrb[8].mxu0 %v412_v35  ;;  %v253_v31 = vld [vmem:[%s2809_s14 + $0x1c0] sm:$0xff]  ;;  %v422_v35 = vpack.c.bf16 %v236_v30, %v233_v29  ;;  %v275_v29 = vld [vmem:[%s2809_s14 + $0x270] sm:$0xff]  ;;  %v278_v30 = vld [vmem:[%s2809_s14 + $0x288] sm:$0xff] }
  0x9c   : > { %727 = vmatprep.subr.bf16.mxu1 %v2648_v0  ;;  %2229 = vmatprep.mubr.msk.bf16.mxu0 %vm2650_vm0, %v2649_v1 }
  0x9f   : > { %728 = vmatpush1.bf16.msra.mxu1 %v2509_v32  ;;  %v256_v32 = vld [vmem:[%s2809_s14 + $0x1d8] sm:$0xff] }
  0xa0   : > { %729 = vmatprep.subr.bf16.mxu1 %v2648_v0 }
  0xa3   : > { %730 = vmatpush1.bf16.msra.mxu1 %v2511_v36  ;;  %2230 = vmatmul.mubr.bf16.gmra.mrb[12].mxu0 %v415_v45  ;;  %v433_v36 = vpack.c.bf16 %v256_v32, %v253_v31  ;;  %v436_v45 = vpack.c.bf16 %v262_v41, %v259_v40  ;;  %v295_v31 = vld [vmem:[%s2809_s14 + $0x310] sm:$0xff]  ;;  %v298_v32 = vld [vmem:[%s2809_s14 + $0x328] sm:$0xff]  ;;  %v301_v40 = vld [vmem:[%s2809_s14 + $0x340] sm:$0xff] }
  0xa4   : > { %731 = vmatprep.subr.bf16.mxu1 %v2648_v0  ;;  %2233 = vmatprep.mubr.msk.bf16.mxu0 %vm2650_vm0, %v2649_v1  ;;  %v414_v0 = vpack.c.bf16 %v219_v61, %v216_v60  ;;  %v258_v60 = vld [vmem:[%s2809_s14 + $0x1e8] sm:$0xff]  ;;  %v261_v61 = vld [vmem:[%s2809_s14 + $0x200] sm:$0xff]  ;;  %v304_v41 = vld [vmem:[%s2809_s14 + $0x358] sm:$0xff] }
  0xa7   : > { %732 = vmatpush1.bf16.msra.mxu1 %v2513_v37  ;;  %v426_v37 = vpack.c.bf16 %v243_v34, %v240_v33  ;;  %v282_v33 = vld [vmem:[%s2809_s14 + $0x2a8] sm:$0xff]  ;;  %v285_v34 = vld [vmem:[%s2809_s14 + $0x2c0] sm:$0xff] }
  0xaa   : > { %734 = vmatmul.mubr.bf16.vlgmr.msra.gmra.mrb[0].mxu1 %v404_v44  ;;  %v425_v44 = vpack.c.bf16 %v242_v39, %v239_v38  ;;  %v281_v38 = vld [vmem:[%s2809_s14 + $0x2a0] sm:$0xff]  ;;  %v284_v39 = vld [vmem:[%s2809_s14 + $0x2b8] sm:$0xff] }
  0xab   : > { %741 = vmatprep.mubr.bf16.mxu1 %v408_v46  ;;  %2234 = vmatmul.mubr.bf16.gmra.mrb[16].mxu0 %v418_v54  ;;  %v429_v46 = vpack.c.bf16 %v249_v43, %v246_v42  ;;  %v439_v54 = vpack.c.bf16 %v268_v50, %v265_v49  ;;  %v288_v42 = vld [vmem:[%s2809_s14 + $0x2d8] sm:$0xff]  ;;  %v291_v43 = vld [vmem:[%s2809_s14 + $0x2f0] sm:$0xff]  ;;  %v310_v50 = vld [vmem:[%s2809_s14 + $0x388] sm:$0xff] }
  0xac   : > { %2237 = vmatprep.mubr.msk.bf16.mxu0 %vm2650_vm0, %v2649_v1  ;;  %v307_v49 = vld [vmem:[%s2809_s14 + $0x370] sm:$0xff] }
  0xb2   : > { %742 = vmatmul.mubr.bf16.gmra.mrb[4].mxu1 %v407_v53  ;;  %v428_v53 = vpack.c.bf16 %v248_v48, %v245_v47  ;;  %v287_v47 = vld [vmem:[%s2809_s14 + $0x2d0] sm:$0xff]  ;;  %v290_v48 = vld [vmem:[%s2809_s14 + $0x2e8] sm:$0xff] }
  0xb3   : > { %749 = vmatprep.mubr.bf16.mxu1 %v411_v55  ;;  %2238 = vmatmul.mubr.bf16.gmra.mrb[20].mxu0 %v421_v63  ;;  %v432_v55 = vpack.c.bf16 %v255_v52, %v252_v51  ;;  %v442_v63 = vpack.c.bf16 %v274_v59, %v271_v58  ;;  %v294_v51 = vld [vmem:[%s2809_s14 + $0x308] sm:$0xff]  ;;  %v297_v52 = vld [vmem:[%s2809_s14 + $0x320] sm:$0xff]  ;;  %v316_v59 = vld [vmem:[%s2809_s14 + $0x3b8] sm:$0xff] }
  0xb4   : > { %2241 = vmatprep.mubr.msk.bf16.mxu0 %vm2650_vm0, %v2649_v1  ;;  %v313_v58 = vld [vmem:[%s2809_s14 + $0x3a0] sm:$0xff] }
  0xba   : > { %750 = vmatmul.mubr.bf16.gmra.mrb[8].mxu1 %v410_v62  ;;  %v431_v62 = vpack.c.bf16 %v254_v57, %v251_v56  ;;  %v293_v56 = vld [vmem:[%s2809_s14 + $0x300] sm:$0xff]  ;;  %v296_v57 = vld [vmem:[%s2809_s14 + $0x318] sm:$0xff] }
  0xbb   : > { %757 = vmatprep.mubr.bf16.mxu1 %v414_v0  ;;  %2242 = vmatmul.mubr.bf16.gmra.mrb[24].mxu0 %v424_v9  ;;  %v435_v0 = vpack.c.bf16 %v261_v61, %v258_v60  ;;  %v445_v9 = vpack.c.bf16 %v280_v5, %v277_v4  ;;  %v300_v60 = vld [vmem:[%s2809_s14 + $0x338] sm:$0xff]  ;;  %v303_v61 = vld [vmem:[%s2809_s14 + $0x350] sm:$0xff]  ;;  %v322_v5 = vld [vmem:[%s2809_s14 + $0x3e8] sm:$0xff] }
  0xbc   : > { %2245 = vmatprep.mubr.msk.bf16.mxu0 %vm2650_vm0, %v2649_v1  ;;  %v319_v4 = vld [vmem:[%s2809_s14 + $0x3d0] sm:$0xff] }
  0xc2   : > { %758 = vmatmul.mubr.bf16.gmra.mrb[12].mxu1 %v413_v8  ;;  %v434_v8 = vpack.c.bf16 %v260_v3, %v257_v2  ;;  %v299_v2 = vld [vmem:[%s2809_s14 + $0x330] sm:$0xff]  ;;  %v302_v3 = vld [vmem:[%s2809_s14 + $0x348] sm:$0xff] }
  0xc3   : > { %765 = vmatprep.mubr.bf16.mxu1 %v417_v10  ;;  %2246 = vmatmul.mubr.bf16.gmra.mrb[28].mxu0 %v427_v18  ;;  %v438_v10 = vpack.c.bf16 %v267_v7, %v264_v6  ;;  %v448_v18 = vpack.c.bf16 %v286_v14, %v283_v13  ;;  %v306_v6 = vld [vmem:[%s2809_s14 + $0x368] sm:$0xff]  ;;  %v309_v7 = vld [vmem:[%s2809_s14 + $0x380] sm:$0xff]  ;;  %v328_v14 = vld [vmem:[%s2809_s14 + $0x418] sm:$0xff] }
  0xc4   : > { %2249 = vmatprep.mubr.msk.bf16.mxu0 %vm2650_vm0, %v2649_v1  ;;  %v325_v13 = vld [vmem:[%s2809_s14 + $0x400] sm:$0xff] }
  0xca   : > { %766 = vmatmul.mubr.bf16.gmra.mrb[16].mxu1 %v416_v17  ;;  %v437_v17 = vpack.c.bf16 %v266_v12, %v263_v11  ;;  %v305_v11 = vld [vmem:[%s2809_s14 + $0x360] sm:$0xff]  ;;  %v308_v12 = vld [vmem:[%s2809_s14 + $0x378] sm:$0xff] }
  0xcb   : > { %773 = vmatprep.mubr.bf16.mxu1 %v420_v19  ;;  %2250 = vmatmul.mubr.bf16.gmra.mrb[32].mxu0 %v430_v27  ;;  %v441_v19 = vpack.c.bf16 %v273_v16, %v270_v15  ;;  %v451_v27 = vpack.c.bf16 %v292_v23, %v289_v22  ;;  %v312_v15 = vld [vmem:[%s2809_s14 + $0x398] sm:$0xff]  ;;  %v315_v16 = vld [vmem:[%s2809_s14 + $0x3b0] sm:$0xff]  ;;  %v334_v23 = vld [vmem:[%s2809_s14 + $0x448] sm:$0xff] }
  0xcc   : > { %2253 = vmatprep.mubr.msk.bf16.mxu0 %vm2650_vm0, %v2649_v1  ;;  %v331_v22 = vld [vmem:[%s2809_s14 + $0x430] sm:$0xff] }
  0xd2   : > { %774 = vmatmul.mubr.bf16.gmra.mrb[20].mxu1 %v419_v26  ;;  %v440_v26 = vpack.c.bf16 %v272_v21, %v269_v20  ;;  %v311_v20 = vld [vmem:[%s2809_s14 + $0x390] sm:$0xff]  ;;  %v314_v21 = vld [vmem:[%s2809_s14 + $0x3a8] sm:$0xff] }
  0xd3   : > { %781 = vmatprep.mubr.bf16.mxu1 %v423_v28  ;;  %2254 = vmatmul.mubr.bf16.gmra.mrb[36].mxu0 %v433_v36  ;;  %v444_v28 = vpack.c.bf16 %v279_v25, %v276_v24  ;;  %v454_v36 = vpack.c.bf16 %v298_v32, %v295_v31  ;;  %v318_v24 = vld [vmem:[%s2809_s14 + $0x3c8] sm:$0xff]  ;;  %v321_v25 = vld [vmem:[%s2809_s14 + $0x3e0] sm:$0xff]  ;;  %v340_v32 = vld [vmem:[%s2809_s14 + $0x478] sm:$0xff] }
  0xd4   : > { %2257 = vmatprep.mubr.msk.bf16.mxu0 %vm2650_vm0, %v2649_v1  ;;  %v337_v31 = vld [vmem:[%s2809_s14 + $0x460] sm:$0xff] }
  0xda   : > { %782 = vmatmul.mubr.bf16.gmra.mrb[24].mxu1 %v422_v35  ;;  %v443_v35 = vpack.c.bf16 %v278_v30, %v275_v29  ;;  %v317_v29 = vld [vmem:[%s2809_s14 + $0x3c0] sm:$0xff]  ;;  %v320_v30 = vld [vmem:[%s2809_s14 + $0x3d8] sm:$0xff] }
  0xdb   : > { %789 = vmatprep.mubr.bf16.mxu1 %v426_v37  ;;  %2258 = vmatmul.mubr.bf16.gmra.mrb[40].mxu0 %v436_v45  ;;  %v447_v37 = vpack.c.bf16 %v285_v34, %v282_v33  ;;  %v457_v45 = vpack.c.bf16 %v304_v41, %v301_v40  ;;  %v324_v33 = vld [vmem:[%s2809_s14 + $0x3f8] sm:$0xff]  ;;  %v327_v34 = vld [vmem:[%s2809_s14 + $0x410] sm:$0xff]  ;;  %v346_v41 = vld [vmem:[%s2809_s14 + $0x4a8] sm:$0xff] }
  0xdc   : > { %2261 = vmatprep.mubr.msk.bf16.mxu0 %vm2650_vm0, %v2649_v1  ;;  %v343_v40 = vld [vmem:[%s2809_s14 + $0x490] sm:$0xff] }
  0xe2   : > { %790 = vmatmul.mubr.bf16.gmra.mrb[28].mxu1 %v425_v44  ;;  %v446_v44 = vpack.c.bf16 %v284_v39, %v281_v38  ;;  %v323_v38 = vld [vmem:[%s2809_s14 + $0x3f0] sm:$0xff]  ;;  %v326_v39 = vld [vmem:[%s2809_s14 + $0x408] sm:$0xff] }
  0xe3   : > { %797 = vmatprep.mubr.bf16.mxu1 %v429_v46  ;;  %2262 = vmatmul.mubr.bf16.gmra.mrb[44].mxu0 %v439_v54  ;;  %v450_v46 = vpack.c.bf16 %v291_v43, %v288_v42  ;;  %v460_v54 = vpack.c.bf16 %v310_v50, %v307_v49  ;;  %v330_v42 = vld [vmem:[%s2809_s14 + $0x428] sm:$0xff]  ;;  %v333_v43 = vld [vmem:[%s2809_s14 + $0x440] sm:$0xff]  ;;  %v352_v50 = vld [vmem:[%s2809_s14 + $0x4d8] sm:$0xff] }
  0xe4   : > { %2265 = vmatprep.mubr.msk.bf16.mxu0 %vm2650_vm0, %v2649_v1  ;;  %v349_v49 = vld [vmem:[%s2809_s14 + $0x4c0] sm:$0xff] }
  0xea   : > { %798 = vmatmul.mubr.bf16.gmra.mrb[32].mxu1 %v428_v53  ;;  %v449_v53 = vpack.c.bf16 %v290_v48, %v287_v47  ;;  %v329_v47 = vld [vmem:[%s2809_s14 + $0x420] sm:$0xff]  ;;  %v332_v48 = vld [vmem:[%s2809_s14 + $0x438] sm:$0xff] }
  0xeb   : > { %805 = vmatprep.mubr.bf16.mxu1 %v432_v55  ;;  %2266 = vmatmul.mubr.bf16.gmra.mrb[48].mxu0 %v442_v63  ;;  %v453_v55 = vpack.c.bf16 %v297_v52, %v294_v51  ;;  %v463_v63 = vpack.c.bf16 %v316_v59, %v313_v58  ;;  %v336_v51 = vld [vmem:[%s2809_s14 + $0x458] sm:$0xff]  ;;  %v339_v52 = vld [vmem:[%s2809_s14 + $0x470] sm:$0xff]  ;;  %v358_v59 = vld [vmem:[%s2809_s14 + $0x508] sm:$0xff] }
  0xec   : > { %2269 = vmatprep.mubr.msk.bf16.mxu0 %vm2650_vm0, %v2649_v1  ;;  %v355_v58 = vld [vmem:[%s2809_s14 + $0x4f0] sm:$0xff] }
  0xf2   : > { %806 = vmatmul.mubr.bf16.gmra.mrb[36].mxu1 %v431_v62  ;;  %v452_v62 = vpack.c.bf16 %v296_v57, %v293_v56  ;;  %v335_v56 = vld [vmem:[%s2809_s14 + $0x450] sm:$0xff]  ;;  %v338_v57 = vld [vmem:[%s2809_s14 + $0x468] sm:$0xff] }
  0xf3   : > { %813 = vmatprep.mubr.bf16.mxu1 %v435_v0  ;;  %2270 = vmatmul.mubr.bf16.gmra.mrb[52].mxu0 %v445_v9  ;;  %v456_v0 = vpack.c.bf16 %v303_v61, %v300_v60  ;;  %v466_v9 = vpack.c.bf16 %v322_v5, %v319_v4  ;;  %v342_v60 = vld [vmem:[%s2809_s14 + $0x488] sm:$0xff]  ;;  %v345_v61 = vld [vmem:[%s2809_s14 + $0x4a0] sm:$0xff]  ;;  %v364_v5 = vld [vmem:[%s2809_s14 + $0x538] sm:$0xff] }
  0xf4   : > { %2273 = vmatprep.mubr.msk.bf16.mxu0 %vm2650_vm0, %v2649_v1  ;;  %v361_v4 = vld [vmem:[%s2809_s14 + $0x520] sm:$0xff] }
  0xfa   : > { %814 = vmatmul.mubr.bf16.gmra.mrb[40].mxu1 %v434_v8  ;;  %v455_v8 = vpack.c.bf16 %v302_v3, %v299_v2  ;;  %v341_v2 = vld [vmem:[%s2809_s14 + $0x480] sm:$0xff]  ;;  %v344_v3 = vld [vmem:[%s2809_s14 + $0x498] sm:$0xff] }
  0xfb   : > { %821 = vmatprep.mubr.bf16.mxu1 %v438_v10  ;;  %2274 = vmatmul.mubr.bf16.gmra.mrb[56].mxu0 %v448_v18  ;;  %v459_v10 = vpack.c.bf16 %v309_v7, %v306_v6  ;;  %v469_v18 = vpack.c.bf16 %v328_v14, %v325_v13  ;;  %v348_v6 = vld [vmem:[%s2809_s14 + $0x4b8] sm:$0xff]  ;;  %v351_v7 = vld [vmem:[%s2809_s14 + $0x4d0] sm:$0xff] }
  0xfc   : > { %2277 = vmatprep.mubr.msk.bf16.mxu0 %vm2650_vm0, %v2649_v1 }
 0x102   : > { %822 = vmatmul.mubr.bf16.gmra.mrb[44].mxu1 %v437_v17  ;;  %v458_v17 = vpack.c.bf16 %v308_v12, %v305_v11  ;;  %v487_v11 = vpack.c.bf16 %v364_v5, %v361_v4  ;;  %v480_v12 = vpack.c.bf16 %v351_v7, %v348_v6 }
 0x103   : > { %829 = vmatprep.mubr.bf16.mxu1 %v441_v19  ;;  %2278 = vmatmul.mubr.bf16.gmra.mrb[60].mxu0 %v451_v27  ;;  %v462_v19 = vpack.c.bf16 %v315_v16, %v312_v15  ;;  %v472_v27 = vpack.c.bf16 %v334_v23, %v331_v22  ;;  %v347_v15 = vld [vmem:[%s2809_s14 + $0x4b0] sm:$0xff]  ;;  %v350_v16 = vld [vmem:[%s2809_s14 + $0x4c8] sm:$0xff] }
 0x104   : > { %2281 = vmatprep.mubr.msk.bf16.mxu0 %vm2650_vm0, %v2649_v1  ;;  %v479_v22 = vpack.c.bf16 %v350_v16, %v347_v15 }
 0x10a   : > { %830 = vmatmul.mubr.bf16.gmra.mrb[48].mxu1 %v440_v26  ;;  %v461_v26 = vpack.c.bf16 %v314_v21, %v311_v20  ;;  %v357_v20 = vld [vmem:[%s2809_s14 + $0x500] sm:$0xff] }
 0x10b   : > { %837 = vmatprep.mubr.bf16.mxu1 %v444_v28  ;;  %2282 = vmatmul.mubr.bf16.gmra.mrb[64].mxu0 %v454_v36  ;;  %v465_v28 = vpack.c.bf16 %v321_v25, %v318_v24  ;;  %v475_v36 = vpack.c.bf16 %v340_v32, %v337_v31  ;;  %v376_v31 = vld [vmem:[%s2809_s14 + $0x598] sm:$0xff] }
 0x10c   : > { %2285 = vmatprep.mubr.msk.bf16.mxu0 %vm2650_vm0, %v2649_v1  ;;  %v360_v32 = vld [vmem:[%s2809_s14 + $0x518] sm:$0xff] }
 0x112   : > { %838 = vmatmul.mubr.bf16.gmra.mrb[52].mxu1 %v443_v35  ;;  %v464_v35 = vpack.c.bf16 %v320_v30, %v317_v29  ;;  %v356_v29 = vld [vmem:[%s2809_s14 + $0x4f8] sm:$0xff]  ;;  %v373_v30 = vld [vmem:[%s2809_s14 + $0x580] sm:$0xff] }
 0x113   : > { %845 = vmatprep.mubr.bf16.mxu1 %v447_v37  ;;  %2286 = vmatmul.mubr.bf16.gmra.mrb[68].mxu0 %v457_v45  ;;  %v468_v37 = vpack.c.bf16 %v327_v34, %v324_v33  ;;  %v478_v45 = vpack.c.bf16 %v346_v41, %v343_v40  ;;  %v363_v33 = vld [vmem:[%s2809_s14 + $0x530] sm:$0xff] }
 0x114   : > { %2289 = vmatprep.mubr.msk.bf16.mxu0 %vm2650_vm0, %v2649_v1  ;;  %v359_v41 = vld [vmem:[%s2809_s14 + $0x510] sm:$0xff] }
 0x11a   : > { %846 = vmatmul.mubr.bf16.gmra.mrb[56].mxu1 %v446_v44  ;;  %v467_v44 = vpack.c.bf16 %v326_v39, %v323_v38  ;;  %v486_v38 = vpack.c.bf16 %v363_v33, %v360_v32 }
 0x11b   : > { %853 = vmatprep.mubr.bf16.mxu1 %v450_v46  ;;  %2290 = vmatmul.mubr.bf16.gmra.mrb[72].mxu0 %v460_v54  ;;  %v471_v46 = vpack.c.bf16 %v333_v43, %v330_v42  ;;  %v481_v54 = vpack.c.bf16 %v352_v50, %v349_v49  ;;  %v362_v42 = vld [vmem:[%s2809_s14 + $0x528] sm:$0xff]  ;;  %v379_v43 = vld [vmem:[%s2809_s14 + $0x5b0] sm:$0xff] }
 0x11c   : > { %2293 = vmatprep.mubr.msk.bf16.mxu0 %vm2650_vm0, %v2649_v1 }
 0x122   : > { %854 = vmatmul.mubr.bf16.gmra.mrb[60].mxu1 %v449_v53  ;;  %v470_v53 = vpack.c.bf16 %v332_v48, %v329_v47 }
 0x123   : > { %861 = vmatprep.mubr.bf16.mxu1 %v453_v55  ;;  %2294 = vmatmul.mubr.bf16.gmra.mrb[76].mxu0 %v463_v63  ;;  %v474_v55 = vpack.c.bf16 %v339_v52, %v336_v51  ;;  %v484_v63 = vpack.c.bf16 %v358_v59, %v355_v58  ;;  %v485_v51 = vpack.c.bf16 %v362_v42, %v359_v41  ;;  %v397_v41 = vld [vmem:[%s2809_s14 + $0x640] sm:$0xff]  ;;  %v400_v42 = vld [vmem:[%s2809_s14 + $0x658] sm:$0xff] }
 0x124   : > { %2297 = vmatprep.mubr.msk.bf16.mxu0 %vm2650_vm0, %v2649_v1 }
 0x12a   : > { %862 = vmatmul.mubr.bf16.gmra.mrb[64].mxu1 %v452_v62  ;;  %v473_v62 = vpack.c.bf16 %v338_v57, %v335_v56 }
 0x12b   : > { %869 = vmatprep.mubr.bf16.mxu1 %v456_v0  ;;  %2298 = vmatmul.mubr.bf16.gmra.mrb[80].mxu0 %v466_v9  ;;  %v477_v0 = vpack.c.bf16 %v345_v61, %v342_v60  ;;  %v476_v9 = vpack.c.bf16 %v344_v3, %v341_v2  ;;  %v365_v61 = vld [vmem:[%s2809_s14 + $0x540] sm:$0xff]  ;;  %v372_v2 = vld [vmem:[%s2809_s14 + $0x578] sm:$0xff]  ;;  %v375_v3 = vld [vmem:[%s2809_s14 + $0x590] sm:$0xff] }
 0x12c   : > { %2301 = vmatprep.mubr.msk.bf16.mxu0 %vm2650_vm0, %v2649_v1 }
 0x132   : > { %870 = vmatmul.mubr.bf16.gmra.mrb[68].mxu1 %v455_v8 }
 0x133   : > { %877 = vmatprep.mubr.bf16.mxu1 %v459_v10  ;;  %2302 = vmatmul.mubr.bf16.gmra.mrb[84].mxu0 %v469_v18  ;;  %v370_v18 = vld [vmem:[%s2809_s14 + $0x568] sm:$0xff] }
 0x134   : > { %2305 = vmatprep.mubr.msk.bf16.mxu0 %vm2650_vm0, %v2649_v1 }
 0x13a   : > { %878 = vmatmul.mubr.bf16.gmra.mrb[72].mxu1 %v458_v17  ;;  %v367_v17 = vld [vmem:[%s2809_s14 + $0x550] sm:$0xff] }
 0x13b   : > { %885 = vmatprep.mubr.bf16.mxu1 %v462_v19  ;;  %2306 = vmatmul.mubr.bf16.gmra.mrb[88].mxu0 %v472_v27  ;;  %v354_v19 = vld [vmem:[%s2809_s14 + $0x4e8] sm:$0xff]  ;;  %v490_v24 = vpack.c.bf16 %v370_v18, %v367_v17  ;;  %v371_v18 = vld [vmem:[%s2809_s14 + $0x570] sm:$0xff] }
 0x13c   : > { %2309 = vmatprep.mubr.msk.bf16.mxu0 %vm2650_vm0, %v2649_v1  ;;  %v483_v25 = vpack.c.bf16 %v357_v20, %v354_v19  ;;  %v374_v19 = vld [vmem:[%s2809_s14 + $0x588] sm:$0xff]  ;;  %v391_v20 = vld [vmem:[%s2809_s14 + $0x610] sm:$0xff] }
 0x142   : > { %886 = vmatmul.mubr.bf16.gmra.mrb[76].mxu1 %v461_v26 }
 0x143   : > { %893 = vmatprep.mubr.bf16.mxu1 %v465_v28  ;;  %2310 = vmatmul.mubr.bf16.gmra.mrb[92].mxu0 %v475_v36  ;;  %v353_v28 = vld [vmem:[%s2809_s14 + $0x4e0] sm:$0xff] }
 0x144   : > { %2313 = vmatprep.mubr.msk.bf16.mxu0 %vm2650_vm0, %v2649_v1 }
 0x14a   : > { %894 = vmatmul.mubr.bf16.gmra.mrb[80].mxu1 %v464_v35  ;;  %v482_v35 = vpack.c.bf16 %v356_v29, %v353_v28  ;;  %v491_v28 = vpack.c.bf16 %v374_v19, %v371_v18 }
 0x14b   : > { %901 = vmatprep.mubr.bf16.mxu1 %v468_v37  ;;  %2314 = vmatmul.mubr.bf16.gmra.mrb[96].mxu0 %v478_v45  ;;  %v493_v37 = vpack.c.bf16 %v376_v31, %v373_v30  ;;  %v366_v45 = vld [vmem:[%s2809_s14 + $0x548] sm:$0xff] }
 0x14c   : > { %2317 = vmatprep.mubr.msk.bf16.mxu0 %vm2650_vm0, %v2649_v1 }
 0x152   : > { %902 = vmatmul.mubr.bf16.gmra.mrb[84].mxu1 %v467_v44  ;;  %v382_v44 = vld [vmem:[%s2809_s14 + $0x5c8] sm:$0xff] }
 0x153   : > { %909 = vmatprep.mubr.bf16.mxu1 %v471_v46  ;;  %2318 = vmatmul.mubr.bf16.gmra.mrb[100].mxu0 %v481_v54  ;;  %v369_v46 = vld [vmem:[%s2809_s14 + $0x560] sm:$0xff] }
 0x154   : > { %2321 = vmatprep.mubr.msk.bf16.mxu0 %vm2650_vm0, %v2649_v1 }
 0x15a   : > { %910 = vmatmul.mubr.bf16.gmra.mrb[88].mxu1 %v470_v53  ;;  %v496_v53 = vpack.c.bf16 %v382_v44, %v379_v43  ;;  %v384_v43 = vld [vmem:[%s2809_s14 + $0x5d8] sm:$0xff]  ;;  %v387_v44 = vld [vmem:[%s2809_s14 + $0x5f0] sm:$0xff] }
 0x15b   : > { %917 = vmatprep.mubr.bf16.mxu1 %v474_v55  ;;  %2322 = vmatmul.mubr.bf16.gmra.mrb[104].mxu0 %v484_v63  ;;  %v489_v55 = vpack.c.bf16 %v369_v46, %v366_v45  ;;  %v385_v63 = vld [vmem:[%s2809_s14 + $0x5e0] sm:$0xff] }
 0x15c   : > { %2325 = vmatprep.mubr.msk.bf16.mxu0 %vm2650_vm0, %v2649_v1 }
 0x15e   : > { %v1047_v8 = vpop.f32.mrb[0].mxu0 }
 0x15f   : > { %v2219_v10 = vpop.f32.mrb[1].mxu0 }
 0x160   : > { %v1050_v13 = vpop.f32.mrb[2].mxu0 }
 0x161   : > { %v2220_v14 = vpop.f32.mrb[3].mxu0 }
 0x162   : > { %918 = vmatmul.mubr.bf16.gmra.mrb[92].mxu1 %v473_v62  ;;  %v368_v62 = vld [vmem:[%s2809_s14 + $0x558] sm:$0xff] }
 0x163   : > { %925 = vmatprep.mubr.bf16.mxu1 %v477_v0  ;;  %2326 = vmatmul.mubr.bf16.gmra.mrb[108].mxu0 %v487_v11  ;;  %v388_v0 = vld [vmem:[%s2809_s14 + $0x5f8] sm:$0xff] }
 0x164   : > { %2329 = vmatprep.mubr.msk.bf16.mxu0 %vm2650_vm0, %v2649_v1  ;;  %v499_v10 = vpack.c.bf16 %v388_v0, %v385_v63  ;;  %v393_v63 = vld [vmem:[%s2809_s14 + $0x620] sm:$0xff] }
 0x166   : > { %v3065_v21 = vpop.f32.mrb[4].mxu0 }
 0x167   : > { %v2223_v23 = vpop.f32.mrb[5].mxu0 }
 0x168   : > { %v3067_v26 = vpop.f32.mrb[6].mxu0  ;;  %v381_v23 = vld [vmem:[%s2809_s14 + $0x5c0] sm:$0xff] }
 0x169   : > { %v2224_v27 = vpop.f32.mrb[7].mxu0 }
 0x16a   : > { %926 = vmatmul.mubr.bf16.gmra.mrb[96].mxu1 %v476_v9 }
 0x16b   : > { %933 = vmatprep.mubr.bf16.mxu1 %v480_v12  ;;  %2330 = vmatmul.mubr.bf16.gmra.mrb[112].mxu0 %v490_v24  ;;  %v492_v12 = vpack.c.bf16 %v375_v3, %v372_v2 }
 0x16c   : > { %2333 = vmatprep.mubr.msk.bf16.mxu0 %vm2650_vm0, %v2649_v1 }
 0x16e   : > { %v3077_v34 = vpop.f32.mrb[8].mxu0 }
 0x16f   : > { %v2227_v36 = vpop.f32.mrb[9].mxu0 }
 0x170   : > { %v3079_v39 = vpop.f32.mrb[10].mxu0 }
 0x171   : > { %v2228_v40 = vpop.f32.mrb[11].mxu0 }
 0x172   : > { %934 = vmatmul.mubr.bf16.gmra.mrb[100].mxu1 %v479_v22  ;;  %v378_v22 = vld [vmem:[%s2809_s14 + $0x5a8] sm:$0xff]  ;;  %v380_v40 = vld [vmem:[%s2809_s14 + $0x5b8] sm:$0xff] }
 0x173   : > { %941 = vmatprep.mubr.bf16.mxu1 %v483_v25  ;;  %2334 = vmatmul.mubr.bf16.gmra.mrb[116].mxu0 %v493_v37  ;;  %v495_v32 = vpack.c.bf16 %v381_v23, %v378_v22 }
 0x174   : > { %2337 = vmatprep.mubr.msk.bf16.mxu0 %vm2650_vm0, %v2649_v1 }
 0x176   : > { %v3090_v48 = vpop.f32.mrb[12].mxu0 }
 0x177   : > { %v2231_v52 = vpop.f32.mrb[13].mxu0 }
 0x178   : > { %v3092_v56 = vpop.f32.mrb[14].mxu0 }
 0x179   : > { %v2232_v59 = vpop.f32.mrb[15].mxu0 }
 0x17a   : > { %942 = vmatmul.mubr.bf16.gmra.mrb[104].mxu1 %v482_v35 }
 0x17b   : > { %949 = vmatprep.mubr.bf16.mxu1 %v486_v38  ;;  %2338 = vmatmul.mubr.bf16.gmra.mrb[120].mxu0 %v496_v53  ;;  %v498_v53 = vpack.c.bf16 %v387_v44, %v384_v43 }
 0x17c   : > { %2341 = vmatprep.mubr.msk.bf16.mxu0 %vm2650_vm0, %v2649_v1 }
 0x17d   : > { %v735_v47 = vpop.f32.mrb[0].mxu1 }
 0x17e   : > { %v1048_v49 = vadd.f32 %v1047_v8, %v735_v47  ;;  %v737_v50 = vpop.f32.mrb[1].mxu1  ;;  %v3105_v5 = vpop.f32.mrb[16].mxu0  ;;  %v488_v8 = vpack.c.bf16 %v368_v62, %v365_v61  ;;  %v403_v61 = vld [vmem:[%s2809_s14 + $0x670] sm:$0xff]  ;;  %v390_v62 = vld [vmem:[%s2809_s14 + $0x608] sm:$0xff] }
 0x17f   : > { %v738_v54 = vpop.f32.mrb[2].mxu1  ;;  %v2235_v9 = vpop.f32.mrb[17].mxu0 }
 0x180   : > { %v1051_v57 = vadd.f32 %v1050_v13, %v738_v54  ;;  %v740_v58 = vpop.f32.mrb[3].mxu1  ;;  %v3108_v13 = vpop.f32.mrb[18].mxu0  ;;  %v501_v9 = vpack.c.bf16 %v393_v63, %v390_v62 }
 0x181   : > { %v2236_v16 = vpop.f32.mrb[19].mxu0 }
 0x182   : > { %v1958_v60 = vpack.c.bf16 %v1051_v57, %v1048_v49  ;;  %950 = vmatmul.mubr.bf16.gmra.mrb[108].mxu1 %v485_v51  ;;  %v505_v51 = vpack.c.bf16 %v400_v42, %v397_v41  ;;  %v396_v16 = vld [vmem:[%s2809_s14 + $0x638] sm:$0xff] }
 0x183   : > { %957 = vmatprep.mubr.bf16.mxu1 %v489_v55  ;;  %2342 = vmatmul.mubr.bf16.gmra.mrb[124].mxu0 %v499_v10 }
 0x184   : > { %1959 = vst [vmem:[%s3100_s23] sm:$0xff] %v1958_v60   ;;  %2345 = vmatprep.mubr.msk.bf16.mxu0 %vm2650_vm0, %v2649_v1  ;;  %v386_v60 = vld [vmem:[%s2809_s14 + $0x5e8] sm:$0xff] }
 0x185   : > { %v743_v4 = vpop.f32.mrb[4].mxu1 }
 0x186   : > { %v1056_v6 = vadd.f32 %v3065_v21, %v743_v4  ;;  %v745_v7 = vpop.f32.mrb[5].mxu1  ;;  %v394_v21 = vld [vmem:[%s2809_s14 + $0x628] sm:$0xff]  ;;  %v3120_v25 = vpop.f32.mrb[20].mxu0 }
 0x187   : > { %v746_v11 = vpop.f32.mrb[6].mxu1  ;;  %v2239_v29 = vpop.f32.mrb[21].mxu0  ;;  %v502_v30 = vpack.c.bf16 %v394_v21, %v391_v20  ;;  %v508_v7 = vpack.c.bf16 %v403_v61, %v403_v61 }
 0x188   : > { %v1059_v14 = vadd.f32 %v3067_v26, %v746_v11  ;;  %v748_v15 = vpop.f32.mrb[7].mxu1  ;;  %v3123_v33 = vpop.f32.mrb[22].mxu0 }
 0x189   : > { %v2240_v37 = vpop.f32.mrb[23].mxu0  ;;  %v392_v15 = vld [vmem:[%s2809_s14 + $0x618] sm:$0xff] }
 0x18a   : > { %v1963_v17 = vpack.c.bf16 %v1059_v14, %v1056_v6  ;;  %958 = vmatmul.mubr.bf16.gmra.mrb[112].mxu1 %v488_v8 }
 0x18b   : > { %965 = vmatprep.mubr.bf16.mxu1 %v492_v12  ;;  %2346 = vmatmul.mubr.bf16.gmra.mrb[128].mxu0 %v502_v30 }
 0x18c   : > { %2125 = vst [vmem:[%s3100_s23 + $0x8] sm:$0xff] %v1963_v17   ;;  %2349 = vmatprep.mubr.msk.bf16.mxu0 %vm2650_vm0, %v2649_v1  ;;  %v399_v17 = vld [vmem:[%s2809_s14 + $0x650] sm:$0xff] }
 0x18d   : > { %v751_v24 = vpop.f32.mrb[8].mxu1 }
 0x18e   : > { %v1064_v26 = vadd.f32 %v3077_v34, %v751_v24  ;;  %v753_v27 = vpop.f32.mrb[9].mxu1  ;;  %v377_v34 = vld [vmem:[%s2809_s14 + $0x5a0] sm:$0xff]  ;;  %v3135_v46 = vpop.f32.mrb[24].mxu0  ;;  %v504_v24 = vpack.c.bf16 %v399_v17, %v396_v16 }
 0x18f   : > { %v754_v31 = vpop.f32.mrb[10].mxu1  ;;  %v494_v49 = vpack.c.bf16 %v380_v40, %v377_v34  ;;  %v2243_v50 = vpop.f32.mrb[25].mxu0 }
 0x190   : > { %v1067_v35 = vadd.f32 %v3079_v39, %v754_v31  ;;  %v756_v36 = vpop.f32.mrb[11].mxu1  ;;  %v3138_v54 = vpop.f32.mrb[26].mxu0  ;;  %v395_v31 = vld [vmem:[%s2809_s14 + $0x630] sm:$0xff] }
 0x191   : > { %v2244_v58 = vpop.f32.mrb[27].mxu0 }
 0x192   : > { %v1968_v38 = vpack.c.bf16 %v1067_v35, %v1064_v26  ;;  %966 = vmatmul.mubr.bf16.gmra.mrb[116].mxu1 %v491_v28  ;;  %v402_v35 = vld [vmem:[%s2809_s14 + $0x668] sm:$0xff] }
 0x193   : > { %973 = vmatprep.mubr.bf16.mxu1 %v495_v32  ;;  %2350 = vmatmul.mubr.bf16.gmra.mrb[132].mxu0 %v505_v51  ;;  %v398_v32 = vld [vmem:[%s2809_s14 + $0x648] sm:$0xff] }
 0x194   : > { %2126 = vst [vmem:[%s3100_s23 + $0x10] sm:$0xff] %v1968_v38   ;;  %2353 = vmatprep.mubr.msk.bf16.mxu0 %vm2650_vm0, %v2649_v1  ;;  %v503_v34 = vpack.c.bf16 %v398_v32, %v395_v31 }
 0x195   : > { %v759_v45 = vpop.f32.mrb[12].mxu1 }
 0x196   : > { %v1072_v39 = vadd.f32 %v3090_v48, %v759_v45  ;;  %v761_v47 = vpop.f32.mrb[13].mxu1  ;;  %v383_v48 = vld [vmem:[%s2809_s14 + $0x5d0] sm:$0xff]  ;;  %v1103_v2 = vpop.f32.mrb[28].mxu0 }
 0x197   : > { %v762_v52 = vpop.f32.mrb[14].mxu1  ;;  %v497_v4 = vpack.c.bf16 %v386_v60, %v383_v48  ;;  %v2247_v6 = vpop.f32.mrb[29].mxu0  ;;  %v401_v47 = vld [vmem:[%s2809_s14 + $0x660] sm:$0xff] }
 0x198   : > { %v1075_v55 = vadd.f32 %v3092_v56, %v762_v52  ;;  %v764_v57 = vpop.f32.mrb[15].mxu1  ;;  %v1106_v1 = vpop.f32.mrb[30].mxu0  ;;  %v506_v52 = vpack.c.bf16 %v401_v47, %v401_v47 }
 0x199   : > { %v2248_v12 = vpop.f32.mrb[31].mxu0 }
 0x19a   : > { %v1973_v59 = vpack.c.bf16 %v1075_v55, %v1072_v39  ;;  %974 = vmatmul.mubr.bf16.gmra.mrb[120].mxu1 %v494_v49 }
 0x19b   : > { %981 = vmatprep.mubr.bf16.mxu1 %v498_v53  ;;  %2354 = vmatmul.mubr.bf16.gmra.mrb[136].mxu0 %v508_v7 }
 0x19c   : > { %2127 = vst [vmem:[%s3100_s23 + $0x18] sm:$0xff] %v1973_v59  }
 0x19d   : > { %v767_v0 = vpop.f32.mrb[16].mxu1 }
 0x19e   : > { %v1080_v56 = vadd.f32 %v3105_v5, %v767_v0  ;;  %v769_v3 = vpop.f32.mrb[17].mxu1  ;;  %v389_v5 = vld [vmem:[%s2809_s14 + $0x600] sm:$0xff]  ;;  %v1111_v19 = vpop.f32.mrb[32].mxu0 }
 0x19f   : > { %v770_v8 = vpop.f32.mrb[18].mxu1  ;;  %v500_v21 = vpack.c.bf16 %v392_v15, %v389_v5  ;;  %v2251_v22 = vpop.f32.mrb[33].mxu0 }
 0x1a0   : > { %v1083_v10 = vadd.f32 %v3108_v13, %v770_v8  ;;  %v772_v11 = vpop.f32.mrb[19].mxu1  ;;  %v1114_v26 = vpop.f32.mrb[34].mxu0 }
 0x1a1   : > { %v2252_v29 = vpop.f32.mrb[35].mxu0 }
 0x1a2   : > { %v1978_v14 = vpack.c.bf16 %v1083_v10, %v1080_v56  ;;  %982 = vmatmul.mubr.bf16.gmra.mrb[124].mxu1 %v497_v4 }
 0x1a3   : > { %989 = vmatprep.mubr.bf16.mxu1 %v501_v9 }
 0x1a4   : > { %2128 = vst [vmem:[%s3100_s23 + $0x20] sm:$0xff] %v1978_v14  }
 0x1a5   : > { %v775_v18 = vpop.f32.mrb[20].mxu1 }
 0x1a6   : > { %v1088_v20 = vadd.f32 %v3120_v25, %v775_v18  ;;  %v777_v13 = vpop.f32.mrb[21].mxu1  ;;  %v1119_v36 = vpop.f32.mrb[36].mxu0 }
 0x1a7   : > { %v778_v23 = vpop.f32.mrb[22].mxu1  ;;  %v2255_v40 = vpop.f32.mrb[37].mxu0 }
 0x1a8   : > { %v1091_v27 = vadd.f32 %v3123_v33, %v778_v23  ;;  %v780_v28 = vpop.f32.mrb[23].mxu1  ;;  %v507_v33 = vpack.c.bf16 %v402_v35, %v402_v35  ;;  %v1122_v42 = vpop.f32.mrb[38].mxu0 }
 0x1a9   : > { %v2256_v45 = vpop.f32.mrb[39].mxu0 }
 0x1aa   : > { %v1983_v30 = vpack.c.bf16 %v1091_v27, %v1088_v20  ;;  %990 = vmatmul.mubr.bf16.gmra.mrb[128].mxu1 %v500_v21 }
 0x1ab   : > { %997 = vmatprep.mubr.bf16.mxu1 %v504_v24 }
 0x1ac   : > { %2129 = vst [vmem:[%s3100_s23 + $0x28] sm:$0xff] %v1983_v30  }
 0x1ad   : > { %v783_v25 = vpop.f32.mrb[24].mxu1 }
 0x1ae   : > { %v1096_v37 = vadd.f32 %v3135_v46, %v783_v25  ;;  %v785_v38 = vpop.f32.mrb[25].mxu1  ;;  %v1127_v50 = vpop.f32.mrb[40].mxu0 }
 0x1af   : > { %v786_v41 = vpop.f32.mrb[26].mxu1  ;;  %v2259_v53 = vpop.f32.mrb[41].mxu0 }
 0x1b0   : > { %v1099_v43 = vadd.f32 %v3138_v54, %v786_v41  ;;  %v788_v44 = vpop.f32.mrb[27].mxu1  ;;  %v1130_v57 = vpop.f32.mrb[42].mxu0 }
 0x1b1   : > { %v2260_v54 = vpop.f32.mrb[43].mxu0 }
 0x1b2   : > { %v1988_v39 = vpack.c.bf16 %v1099_v43, %v1096_v37  ;;  %998 = vmatmul.mubr.bf16.gmra.mrb[132].mxu1 %v503_v34 }
 0x1b3   : > { %1005 = vmatprep.mubr.bf16.mxu1 %v507_v33 }
 0x1b4   : > { %2130 = vst [vmem:[%s3100_s23 + $0x30] sm:$0xff] %v1988_v39  }
 0x1b5   : > { %v791_v49 = vpop.f32.mrb[28].mxu1 }
 0x1b6   : > { %v1104_v51 = vadd.f32 %v1103_v2, %v791_v49  ;;  %v793_v46 = vpop.f32.mrb[29].mxu1  ;;  %v1135_v61 = vpop.f32.mrb[44].mxu0 }
 0x1b7   : > { %v794_v55 = vpop.f32.mrb[30].mxu1  ;;  %v2263_v0 = vpop.f32.mrb[45].mxu0 }
 0x1b8   : > { %v1107_v58 = vadd.f32 %v1106_v1, %v794_v55  ;;  %v796_v59 = vpop.f32.mrb[31].mxu1  ;;  %v1138_v3 = vpop.f32.mrb[46].mxu0 }
 0x1b9   : > { %v2264_v6 = vpop.f32.mrb[47].mxu0 }
 0x1ba   : > { %v1993_v48 = vpack.c.bf16 %v1107_v58, %v1104_v51  ;;  %1006 = vmatmul.mubr.bf16.gmra.mrb[136].mxu1 %v506_v52 }
 0x1bc   : > { %2131 = vst [vmem:[%s3100_s23 + $0x38] sm:$0xff] %v1993_v48  }
 0x1bd   : > { %v799_v60 = vpop.f32.mrb[32].mxu1 }
 0x1be   : > { %v1112_v62 = vadd.f32 %v1111_v19, %v799_v60  ;;  %v801_v63 = vpop.f32.mrb[33].mxu1  ;;  %v1143_v9 = vpop.f32.mrb[48].mxu0 }
 0x1bf   : > { %v802_v56 = vpop.f32.mrb[34].mxu1  ;;  %v2267_v11 = vpop.f32.mrb[49].mxu0 }
 0x1c0   : > { %v1115_v2 = vadd.f32 %v1114_v26, %v802_v56  ;;  %v804_v4 = vpop.f32.mrb[35].mxu1  ;;  %v1146_v14 = vpop.f32.mrb[50].mxu0 }
 0x1c1   : > { %v2268_v16 = vpop.f32.mrb[51].mxu0 }
 0x1c2   : > { %v1998_v7 = vpack.c.bf16 %v1115_v2, %v1112_v62 }
 0x1c4   : > { %2132 = vst [vmem:[%s3100_s23 + $0x40] sm:$0xff] %v1998_v7  }
 0x1c5   : > { %v807_v8 = vpop.f32.mrb[36].mxu1 }
 0x1c6   : > { %v1120_v1 = vadd.f32 %v1119_v36, %v807_v8  ;;  %v809_v10 = vpop.f32.mrb[37].mxu1  ;;  %v1151_v19 = vpop.f32.mrb[52].mxu0 }
 0x1c7   : > { %v810_v12 = vpop.f32.mrb[38].mxu1  ;;  %v2271_v21 = vpop.f32.mrb[53].mxu0 }
 0x1c8   : > { %v1123_v5 = vadd.f32 %v1122_v42, %v810_v12  ;;  %v812_v15 = vpop.f32.mrb[39].mxu1  ;;  %v1154_v23 = vpop.f32.mrb[54].mxu0 }
 0x1c9   : > { %v2272_v27 = vpop.f32.mrb[55].mxu0 }
 0x1ca   : > { %v2003_v17 = vpack.c.bf16 %v1123_v5, %v1120_v1 }
 0x1cc   : > { %2133 = vst [vmem:[%s3100_s23 + $0x48] sm:$0xff] %v2003_v17  }
 0x1cd   : > { %v815_v18 = vpop.f32.mrb[40].mxu1 }
 0x1ce   : > { %v1128_v20 = vadd.f32 %v1127_v50, %v815_v18  ;;  %v817_v13 = vpop.f32.mrb[41].mxu1  ;;  %v1159_v30 = vpop.f32.mrb[56].mxu0 }
 0x1cf   : > { %v818_v22 = vpop.f32.mrb[42].mxu1  ;;  %v2275_v35 = vpop.f32.mrb[57].mxu0 }
 0x1d0   : > { %v1131_v24 = vadd.f32 %v1130_v57, %v818_v22  ;;  %v820_v26 = vpop.f32.mrb[43].mxu1  ;;  %v1162_v36 = vpop.f32.mrb[58].mxu0 }
 0x1d1   : > { %v2276_v34 = vpop.f32.mrb[59].mxu0 }
 0x1d2   : > { %v2008_v28 = vpack.c.bf16 %v1131_v24, %v1128_v20 }
 0x1d4   : > { %2134 = vst [vmem:[%s3100_s23 + $0x50] sm:$0xff] %v2008_v28  }
 0x1d5   : > { %v823_v29 = vpop.f32.mrb[44].mxu1 }
 0x1d6   : > { %v1136_v31 = vadd.f32 %v1135_v61, %v823_v29  ;;  %v825_v32 = vpop.f32.mrb[45].mxu1  ;;  %v1167_v33 = vpop.f32.mrb[60].mxu0 }
 0x1d7   : > { %v826_v25 = vpop.f32.mrb[46].mxu1  ;;  %v2279_v44 = vpop.f32.mrb[61].mxu0 }
 0x1d8   : > { %v1139_v37 = vadd.f32 %v1138_v3, %v826_v25  ;;  %v828_v38 = vpop.f32.mrb[47].mxu1  ;;  %v1170_v39 = vpop.f32.mrb[62].mxu0 }
 0x1d9   : > { %v2280_v50 = vpop.f32.mrb[63].mxu0 }
 0x1da   : > { %v2013_v40 = vpack.c.bf16 %v1139_v37, %v1136_v31 }
 0x1dc   : > { %2135 = vst [vmem:[%s3100_s23 + $0x58] sm:$0xff] %v2013_v40  }
 0x1dd   : > { %v831_v41 = vpop.f32.mrb[48].mxu1 }
 0x1de   : > { %v1144_v42 = vadd.f32 %v1143_v9, %v831_v41  ;;  %v833_v43 = vpop.f32.mrb[49].mxu1  ;;  %v1175_v52 = vpop.f32.mrb[64].mxu0 }
 0x1df   : > { %v834_v45 = vpop.f32.mrb[50].mxu1  ;;  %v2283_v57 = vpop.f32.mrb[65].mxu0 }
 0x1e0   : > { %v1147_v47 = vadd.f32 %v1146_v14, %v834_v45  ;;  %v836_v49 = vpop.f32.mrb[51].mxu1  ;;  %v1178_v59 = vpop.f32.mrb[66].mxu0 }
 0x1e1   : > { %v2284_v60 = vpop.f32.mrb[67].mxu0 }
 0x1e2   : > { %v2018_v51 = vpack.c.bf16 %v1147_v47, %v1144_v42 }
 0x1e4   : > { %2136 = vst [vmem:[%s3100_s23 + $0x60] sm:$0xff] %v2018_v51  }
 0x1e5   : > { %v839_v46 = vpop.f32.mrb[52].mxu1 }
 0x1e6   : > { %v1152_v53 = vadd.f32 %v1151_v19, %v839_v46  ;;  %v841_v55 = vpop.f32.mrb[53].mxu1  ;;  %v1183_v63 = vpop.f32.mrb[68].mxu0 }
 0x1e7   : > { %v842_v58 = vpop.f32.mrb[54].mxu1  ;;  %v2287_v3 = vpop.f32.mrb[69].mxu0 }
 0x1e8   : > { %v1155_v54 = vadd.f32 %v1154_v23, %v842_v58  ;;  %v844_v48 = vpop.f32.mrb[55].mxu1  ;;  %v1186_v4 = vpop.f32.mrb[70].mxu0 }
 0x1e9   : > { %v2288_v8 = vpop.f32.mrb[71].mxu0 }
 0x1ea   : > { %v2023_v61 = vpack.c.bf16 %v1155_v54, %v1152_v53 }
 0x1ec   : > { %2137 = vst [vmem:[%s3100_s23 + $0x68] sm:$0xff] %v2023_v61  }
 0x1ed   : > { %v847_v62 = vpop.f32.mrb[56].mxu1 }
 0x1ee   : > { %v1160_v0 = vadd.f32 %v1159_v30, %v847_v62  ;;  %v849_v56 = vpop.f32.mrb[57].mxu1  ;;  %v1191_v10 = vpop.f32.mrb[72].mxu0 }
 0x1ef   : > { %v850_v2 = vpop.f32.mrb[58].mxu1  ;;  %v2291_v14 = vpop.f32.mrb[73].mxu0 }
 0x1f0   : > { %v1163_v6 = vadd.f32 %v1162_v36, %v850_v2  ;;  %v852_v7 = vpop.f32.mrb[59].mxu1  ;;  %v1194_v15 = vpop.f32.mrb[74].mxu0 }
 0x1f1   : > { %v2292_v18 = vpop.f32.mrb[75].mxu0 }
 0x1f2   : > { %v2028_v9 = vpack.c.bf16 %v1163_v6, %v1160_v0 }
 0x1f4   : > { %2138 = vst [vmem:[%s3100_s23 + $0x70] sm:$0xff] %v2028_v9  }
 0x1f5   : > { %v855_v1 = vpop.f32.mrb[60].mxu1 }
 0x1f6   : > { %v1168_v11 = vadd.f32 %v1167_v33, %v855_v1  ;;  %v857_v12 = vpop.f32.mrb[61].mxu1  ;;  %v1199_v13 = vpop.f32.mrb[76].mxu0 }
 0x1f7   : > { %v858_v5 = vpop.f32.mrb[62].mxu1  ;;  %v2295_v23 = vpop.f32.mrb[77].mxu0 }
 0x1f8   : > { %v1171_v16 = vadd.f32 %v1170_v39, %v858_v5  ;;  %v860_v17 = vpop.f32.mrb[63].mxu1  ;;  %v1202_v26 = vpop.f32.mrb[78].mxu0 }
 0x1f9   : > { %v2296_v29 = vpop.f32.mrb[79].mxu0 }
 0x1fa   : > { %v2033_v19 = vpack.c.bf16 %v1171_v16, %v1168_v11 }
 0x1fc   : > { %2139 = vst [vmem:[%s3100_s23 + $0x78] sm:$0xff] %v2033_v19  }
 0x1fd   : > { %v863_v20 = vpop.f32.mrb[64].mxu1 }
 0x1fe   : > { %v1176_v21 = vadd.f32 %v1175_v52, %v863_v20  ;;  %v865_v22 = vpop.f32.mrb[65].mxu1  ;;  %v1207_v32 = vpop.f32.mrb[80].mxu0 }
 0x1ff   : > { %v866_v24 = vpop.f32.mrb[66].mxu1  ;;  %v2299_v36 = vpop.f32.mrb[81].mxu0 }
 0x200   : > { %v1179_v27 = vadd.f32 %v1178_v59, %v866_v24  ;;  %v868_v28 = vpop.f32.mrb[67].mxu1  ;;  %v1210_v38 = vpop.f32.mrb[82].mxu0 }
 0x201   : > { %v2300_v41 = vpop.f32.mrb[83].mxu0 }
 0x202   : > { %v2038_v30 = vpack.c.bf16 %v1179_v27, %v1176_v21 }
 0x204   : > { %2140 = vst [vmem:[%s3100_s23 + $0x80] sm:$0xff] %v2038_v30  }
 0x205   : > { %v871_v31 = vpop.f32.mrb[68].mxu1 }
 0x206   : > { %v1184_v35 = vadd.f32 %v1183_v63, %v871_v31  ;;  %v873_v25 = vpop.f32.mrb[69].mxu1  ;;  %v1215_v43 = vpop.f32.mrb[84].mxu0 }
 0x207   : > { %v874_v37 = vpop.f32.mrb[70].mxu1  ;;  %v2303_v39 = vpop.f32.mrb[85].mxu0 }
 0x208   : > { %v1187_v34 = vadd.f32 %v1186_v4, %v874_v37  ;;  %v876_v40 = vpop.f32.mrb[71].mxu1  ;;  %v1218_v49 = vpop.f32.mrb[86].mxu0 }
 0x209   : > { %v2304_v46 = vpop.f32.mrb[87].mxu0 }
 0x20a   : > { %v2043_v33 = vpack.c.bf16 %v1187_v34, %v1184_v35 }
 0x20c   : > { %2141 = vst [vmem:[%s3100_s23 + $0x88] sm:$0xff] %v2043_v33  }
 0x20d   : > { %v879_v42 = vpop.f32.mrb[72].mxu1 }
 0x20e   : > { %v1192_v44 = vadd.f32 %v1191_v10, %v879_v42  ;;  %v881_v45 = vpop.f32.mrb[73].mxu1  ;;  %v1223_v55 = vpop.f32.mrb[88].mxu0 }
 0x20f   : > { %v882_v47 = vpop.f32.mrb[74].mxu1  ;;  %v2307_v59 = vpop.f32.mrb[89].mxu0 }
 0x210   : > { %v1195_v50 = vadd.f32 %v1194_v15, %v882_v47  ;;  %v884_v51 = vpop.f32.mrb[75].mxu1  ;;  %v1226_v48 = vpop.f32.mrb[90].mxu0 }
 0x211   : > { %v2308_v62 = vpop.f32.mrb[91].mxu0 }
 0x212   : > { %v2048_v52 = vpack.c.bf16 %v1195_v50, %v1192_v44 }
 0x214   : > { %2142 = vst [vmem:[%s3100_s23 + $0x90] sm:$0xff] %v2048_v52  }
 0x215   : > { %v887_v53 = vpop.f32.mrb[76].mxu1 }
 0x216   : > { %v1200_v57 = vadd.f32 %v1199_v13, %v887_v53  ;;  %v889_v58 = vpop.f32.mrb[77].mxu1  ;;  %v1231_v56 = vpop.f32.mrb[92].mxu0 }
 0x217   : > { %v890_v54 = vpop.f32.mrb[78].mxu1  ;;  %v2311_v4 = vpop.f32.mrb[93].mxu0 }
 0x218   : > { %v1203_v60 = vadd.f32 %v1202_v26, %v890_v54  ;;  %v892_v61 = vpop.f32.mrb[79].mxu1  ;;  %v1234_v7 = vpop.f32.mrb[94].mxu0 }
 0x219   : > { %v2312_v1 = vpop.f32.mrb[95].mxu0 }
 0x21a   : > { %v2053_v63 = vpack.c.bf16 %v1203_v60, %v1200_v57 }
 0x21c   : > { %2143 = vst [vmem:[%s3100_s23 + $0x98] sm:$0xff] %v2053_v63  }
 0x21d   : > { %v895_v0 = vpop.f32.mrb[80].mxu1 }
 0x21e   : > { %v1208_v3 = vadd.f32 %v1207_v32, %v895_v0  ;;  %v897_v2 = vpop.f32.mrb[81].mxu1  ;;  %v1239_v12 = vpop.f32.mrb[96].mxu0 }
 0x21f   : > { %v898_v6 = vpop.f32.mrb[82].mxu1  ;;  %v2315_v15 = vpop.f32.mrb[97].mxu0 }
 0x220   : > { %v1211_v8 = vadd.f32 %v1210_v38, %v898_v6  ;;  %v900_v9 = vpop.f32.mrb[83].mxu1  ;;  %v1242_v17 = vpop.f32.mrb[98].mxu0 }
 0x221   : > { %v2316_v20 = vpop.f32.mrb[99].mxu0 }
 0x222   : > { %v2058_v10 = vpack.c.bf16 %v1211_v8, %v1208_v3 }
 0x224   : > { %2144 = vst [vmem:[%s3100_s23 + $0xa0] sm:$0xff] %v2058_v10  }
 0x225   : > { %v903_v11 = vpop.f32.mrb[84].mxu1 }
 0x226   : > { %v1216_v14 = vadd.f32 %v1215_v43, %v903_v11  ;;  %v905_v5 = vpop.f32.mrb[85].mxu1  ;;  %v1247_v22 = vpop.f32.mrb[100].mxu0 }
 0x227   : > { %v906_v16 = vpop.f32.mrb[86].mxu1  ;;  %v2319_v26 = vpop.f32.mrb[101].mxu0 }
 0x228   : > { %v1219_v18 = vadd.f32 %v1218_v49, %v906_v16  ;;  %v908_v19 = vpop.f32.mrb[87].mxu1  ;;  %v1250_v28 = vpop.f32.mrb[102].mxu0 }
 0x229   : > { %v2320_v31 = vpop.f32.mrb[103].mxu0 }
 0x22a   : > { %v2063_v13 = vpack.c.bf16 %v1219_v18, %v1216_v14 }
 0x22c   : > { %2145 = vst [vmem:[%s3100_s23 + $0xa8] sm:$0xff] %v2063_v13  }
 0x22d   : > { %v911_v21 = vpop.f32.mrb[88].mxu1 }
 0x22e   : > { %v1224_v23 = vadd.f32 %v1223_v55, %v911_v21  ;;  %v913_v24 = vpop.f32.mrb[89].mxu1  ;;  %v1255_v25 = vpop.f32.mrb[104].mxu0 }
 0x22f   : > { %v914_v27 = vpop.f32.mrb[90].mxu1  ;;  %v2323_v38 = vpop.f32.mrb[105].mxu0 }
 0x230   : > { %v1227_v29 = vadd.f32 %v1226_v48, %v914_v27  ;;  %v916_v30 = vpop.f32.mrb[91].mxu1  ;;  %v1258_v40 = vpop.f32.mrb[106].mxu0 }
 0x231   : > { %v2324_v42 = vpop.f32.mrb[107].mxu0 }
 0x232   : > { %v2068_v32 = vpack.c.bf16 %v1227_v29, %v1224_v23 }
 0x234   : > { %2146 = vst [vmem:[%s3100_s23 + $0xb0] sm:$0xff] %v2068_v32  }
 0x235   : > { %v919_v35 = vpop.f32.mrb[92].mxu1 }
 0x236   : > { %v1232_v36 = vadd.f32 %v1231_v56, %v919_v35  ;;  %v921_v37 = vpop.f32.mrb[93].mxu1  ;;  %v1263_v45 = vpop.f32.mrb[108].mxu0 }
 0x237   : > { %v922_v34 = vpop.f32.mrb[94].mxu1  ;;  %v2327_v49 = vpop.f32.mrb[109].mxu0 }
 0x238   : > { %v1235_v41 = vadd.f32 %v1234_v7, %v922_v34  ;;  %v924_v33 = vpop.f32.mrb[95].mxu1  ;;  %v1266_v51 = vpop.f32.mrb[110].mxu0 }
 0x239   : > { %v2328_v53 = vpop.f32.mrb[111].mxu0 }
 0x23a   : > { %v2073_v43 = vpack.c.bf16 %v1235_v41, %v1232_v36 }
 0x23c   : > { %2147 = vst [vmem:[%s3100_s23 + $0xb8] sm:$0xff] %v2073_v43  }
 0x23d   : > { %v927_v44 = vpop.f32.mrb[96].mxu1 }
 0x23e   : > { %v1240_v39 = vadd.f32 %v1239_v12, %v927_v44  ;;  %v929_v47 = vpop.f32.mrb[97].mxu1  ;;  %v1271_v58 = vpop.f32.mrb[112].mxu0 }
 0x23f   : > { %v930_v50 = vpop.f32.mrb[98].mxu1  ;;  %v2331_v48 = vpop.f32.mrb[113].mxu0 }
 0x240   : > { %v1243_v46 = vadd.f32 %v1242_v17, %v930_v50  ;;  %v932_v52 = vpop.f32.mrb[99].mxu1  ;;  %v1274_v61 = vpop.f32.mrb[114].mxu0 }
 0x241   : > { %v2332_v0 = vpop.f32.mrb[115].mxu0 }
 0x242   : > { %v2078_v55 = vpack.c.bf16 %v1243_v46, %v1240_v39 }
 0x244   : > { %2148 = vst [vmem:[%s3100_s23 + $0xc0] sm:$0xff] %v2078_v55  }
 0x245   : > { %v935_v57 = vpop.f32.mrb[100].mxu1 }
 0x246   : > { %v1248_v59 = vadd.f32 %v1247_v22, %v935_v57  ;;  %v937_v54 = vpop.f32.mrb[101].mxu1  ;;  %v1279_v2 = vpop.f32.mrb[116].mxu0 }
 0x247   : > { %v938_v60 = vpop.f32.mrb[102].mxu1  ;;  %v2335_v7 = vpop.f32.mrb[117].mxu0 }
 0x248   : > { %v1251_v62 = vadd.f32 %v1250_v28, %v938_v60  ;;  %v940_v63 = vpop.f32.mrb[103].mxu1  ;;  %v1282_v9 = vpop.f32.mrb[118].mxu0 }
 0x249   : > { %v2336_v11 = vpop.f32.mrb[119].mxu0 }
 0x24a   : > { %v2083_v56 = vpack.c.bf16 %v1251_v62, %v1248_v59 }
 0x24c   : > { %2149 = vst [vmem:[%s3100_s23 + $0xc8] sm:$0xff] %v2083_v56  }
 0x24d   : > { %v943_v3 = vpop.f32.mrb[104].mxu1 }
 0x24e   : > { %v1256_v4 = vadd.f32 %v1255_v25, %v943_v3  ;;  %v945_v6 = vpop.f32.mrb[105].mxu1  ;;  %v1287_v5 = vpop.f32.mrb[120].mxu0 }
 0x24f   : > { %v946_v8 = vpop.f32.mrb[106].mxu1  ;;  %v2339_v17 = vpop.f32.mrb[121].mxu0 }
 0x250   : > { %v1259_v1 = vadd.f32 %v1258_v40, %v946_v8  ;;  %v948_v10 = vpop.f32.mrb[107].mxu1  ;;  %v1290_v19 = vpop.f32.mrb[122].mxu0 }
 0x251   : > { %v2340_v21 = vpop.f32.mrb[123].mxu0 }
 0x252   : > { %v2088_v12 = vpack.c.bf16 %v1259_v1, %v1256_v4 }
 0x254   : > { %2150 = vst [vmem:[%s3100_s23 + $0xd0] sm:$0xff] %v2088_v12  }
 0x255   : > { %v951_v14 = vpop.f32.mrb[108].mxu1 }
 0x256   : > { %v1264_v15 = vadd.f32 %v1263_v45, %v951_v14  ;;  %v953_v16 = vpop.f32.mrb[109].mxu1  ;;  %v1295_v24 = vpop.f32.mrb[124].mxu0 }
 0x257   : > { %v954_v18 = vpop.f32.mrb[110].mxu1  ;;  %v2343_v28 = vpop.f32.mrb[125].mxu0 }
 0x258   : > { %v1267_v20 = vadd.f32 %v1266_v51, %v954_v18  ;;  %v956_v13 = vpop.f32.mrb[111].mxu1  ;;  %v1298_v30 = vpop.f32.mrb[126].mxu0 }
 0x259   : > { %v2344_v35 = vpop.f32.mrb[127].mxu0 }
 0x25a   : > { %v2093_v22 = vpack.c.bf16 %v1267_v20, %v1264_v15 }
 0x25c   : > { %2151 = vst [vmem:[%s3100_s23 + $0xd8] sm:$0xff] %v2093_v22  }
 0x25d   : > { %v959_v23 = vpop.f32.mrb[112].mxu1 }
 0x25e   : > { %v1272_v26 = vadd.f32 %v1271_v58, %v959_v23  ;;  %v961_v27 = vpop.f32.mrb[113].mxu1  ;;  %v1303_v37 = vpop.f32.mrb[128].mxu0 }
 0x25f   : > { %v962_v29 = vpop.f32.mrb[114].mxu1  ;;  %v2347_v40 = vpop.f32.mrb[129].mxu0 }
 0x260   : > { %v1275_v31 = vadd.f32 %v1274_v61, %v962_v29  ;;  %v964_v32 = vpop.f32.mrb[115].mxu1  ;;  %v1306_v33 = vpop.f32.mrb[130].mxu0 }
 0x261   : > { %v2348_v44 = vpop.f32.mrb[131].mxu0 }
 0x262   : > { %v2098_v25 = vpack.c.bf16 %v1275_v31, %v1272_v26 }
 0x264   : > { %2152 = vst [vmem:[%s3100_s23 + $0xe0] sm:$0xff] %v2098_v25  }
 0x265   : > { %v967_v36 = vpop.f32.mrb[116].mxu1 }
 0x266   : > { %v1280_v38 = vadd.f32 %v1279_v2, %v967_v36  ;;  %v969_v34 = vpop.f32.mrb[117].mxu1  ;;  %v1311_v47 = vpop.f32.mrb[132].mxu0 }
 0x267   : > { %v970_v41 = vpop.f32.mrb[118].mxu1  ;;  %v2351_v51 = vpop.f32.mrb[133].mxu0 }
 0x268   : > { %v1283_v42 = vadd.f32 %v1282_v9, %v970_v41  ;;  %v972_v43 = vpop.f32.mrb[119].mxu1  ;;  %v1314_v52 = vpop.f32.mrb[134].mxu0 }
 0x269   : > { %v2352_v57 = vpop.f32.mrb[135].mxu0 }
 0x26a   : > { %v2103_v45 = vpack.c.bf16 %v1283_v42, %v1280_v38 }
 0x26c   : > { %2153 = vst [vmem:[%s3100_s23 + $0xe8] sm:$0xff] %v2103_v45  }
 0x26d   : > { %v975_v39 = vpop.f32.mrb[120].mxu1 }
 0x26e   : > { %v1288_v49 = vadd.f32 %v1287_v5, %v975_v39  ;;  %v977_v50 = vpop.f32.mrb[121].mxu1  ;;  %v1319_v54 = vpop.f32.mrb[136].mxu0 }
 0x26f   : > { %v978_v46 = vpop.f32.mrb[122].mxu1  ;;  %v2355_v61 = vpop.f32.mrb[137].mxu0 }
 0x270   : > { %v1291_v53 = vadd.f32 %v1290_v19, %v978_v46  ;;  %v980_v55 = vpop.f32.mrb[123].mxu1  ;;  %v1322_v63 = vpop.f32.mrb[138].mxu0 }
 0x271   : > { %v2356_v3 = vpop.f32.mrb[139].mxu0 }
 0x272   : > { %v2108_v58 = vpack.c.bf16 %v1291_v53, %v1288_v49 }
 0x274   : > { %2154 = vst [vmem:[%s3100_s23 + $0xf0] sm:$0xff] %v2108_v58  }
 0x275   : > { %v983_v59 = vpop.f32.mrb[124].mxu1 }
 0x276   : > { %v1296_v48 = vadd.f32 %v1295_v24, %v983_v59  ;;  %v985_v60 = vpop.f32.mrb[125].mxu1 }
 0x277   : > { %v986_v62 = vpop.f32.mrb[126].mxu1 }
 0x278   : > { %v1299_v0 = vadd.f32 %v1298_v30, %v986_v62  ;;  %v988_v56 = vpop.f32.mrb[127].mxu1 }
 0x27a   : > { %v2113_v2 = vpack.c.bf16 %v1299_v0, %v1296_v48 }
 0x27c   : > { %2155 = vst [vmem:[%s3100_s23 + $0xf8] sm:$0xff] %v2113_v2  }
 0x27d   : > { %v991_v4 = vpop.f32.mrb[128].mxu1 }
 0x27e   : > { %v1304_v6 = vadd.f32 %v1303_v37, %v991_v4  ;;  %v993_v7 = vpop.f32.mrb[129].mxu1 }
 0x27f   : > { %v994_v8 = vpop.f32.mrb[130].mxu1 }
 0x280   : > { %v1307_v9 = vadd.f32 %v1306_v33, %v994_v8  ;;  %v996_v1 = vpop.f32.mrb[131].mxu1 }
 0x282   : > { %v2118_v10 = vpack.c.bf16 %v1307_v9, %v1304_v6 }
 0x284   : > { %2156 = vst [vmem:[%s3100_s23 + $0x100] sm:$0xff] %v2118_v10  }
 0x285   : > { %v999_v11 = vpop.f32.mrb[132].mxu1 }
 0x286   : > { %v1312_v12 = vadd.f32 %v1311_v47, %v999_v11  ;;  %v1001_v14 = vpop.f32.mrb[133].mxu1 }
 0x287   : > { %v1002_v5 = vpop.f32.mrb[134].mxu1 }
 0x288   : > { %v1315_v15 = vadd.f32 %v1314_v52, %v1002_v5  ;;  %v1004_v16 = vpop.f32.mrb[135].mxu1 }
 0x28a   : > { %v2123_v17 = vpack.c.bf16 %v1315_v15, %v1312_v12 }
 0x28c   : > { %2157 = vst [vmem:[%s3100_s23 + $0x108] sm:$0xff] %v2123_v17   ;;  %1678 = sbr.rel (!%p3273_p8) target bundleno = 687 (0x2af), region = 40 }
 0x28d   : > { %v1007_v18 = vpop.f32.mrb[136].mxu1 }
 0x28e   : > { %v1320_v19 = vadd.f32 %v1319_v54, %v1007_v18  ;;  %v1009_v20 = vpop.f32.mrb[137].mxu1 }
 0x28f   : > { %v1010_v13 = vpop.f32.mrb[138].mxu1 }
 0x290   : > { %v1953_v21 = vpack.c.bf16 %v1320_v19, %v1320_v19  ;;  %v1011_v22 = vpop.f32.mrb[139].mxu1 }
 0x292   : > { %1670 = vst [vmem:[%s3100_s23 + $0x110] sm:$0xf] %v1953_v21 }
 0x293   : > { %s3282_s3 = smov (!%p1681_p9, %s1680_s3), 69 }
 0x294   : > { %s3198_s6 = sshll.u32 %s3282_s3, 6 }
 0x295   : > { %s1685_s16 = ssub.s32 4416, %s3198_s6 }
 0x296   : > { %1686 = vsyncadd %s1672_s29, %s1685_s16  ;;  %p1879_p10 = scmp.ne.s32.totalorder %s3198_s6, 0  ;;  %s1954_s21 = smul.u32 4416, %s2690_s13 }
 0x297   : > { %s1691_s17 = sshll.u32 %s3100_s23, 4  ;;  %s2651_s25 = smov [#allocation7]   ;;  %s3211_s17 = int_to_ptr.vmem [resolvable:$true] %s1691_s17 }
 0x298   : > { %s3209_s28 = scalar_lea.hbm %s3258_s2, %s1954_s21  ;;  %s2570_s26 = scalar_lea.vmem %s3211_s17, %s3198_s6 }
 0x299   : > { %p2571_p1 = scmp.ne.s32.totalorder %s3211_s17, %s2570_s26  ;;  %s2574_s19 = sshll.u32 %s2651_s25, 4  ;;  %s2575_s19 = int_to_ptr.vmem [resolvable:$false] %s2574_s19 }
 0x29a   : > { %s2576_s13 = scalar_lea.vmem %s2575_s19, 8832  ;;  %p2577_p4 = scmp.lt.s32.totalorder %s3211_s17, %s2575_s19 }
 0x29b   : > { %p2572_p0 = pnand %p2571_p1, %p1879_p10  ;;  %p2578_p6 = scmp.lt.s32.totalorder %s2576_s13, %s2570_s26 }
 0x29d   : > { %p2573_p7 = pneg %p2572_p0  ;;  %p2579_p11 = por %p2578_p6, %p2577_p4 }
 0x29f   : > { %p2580_p13 = pnand %p2579_p11, %p2573_p7 }
 0x2a1   : > { %2583 = shalt.err (!%p2580_p13)
}
 0x2a2   : > { %s2584_s4 = scalar_lea.hbm %s3209_s28, %s3198_s6  ;;  %s2588_s14 = scalar_lea.hbm %s3258_s2, 17600 }
 0x2a3   : > { %p2585_p12 = scmp.ne.s32.totalorder %s3209_s28, %s2584_s4  ;;  %p2589_p3 = scmp.lt.u32.totalorder %s3209_s28, %s3258_s2 }
 0x2a4   : > { %p2590_p8 = scmp.lt.u32.totalorder %s2588_s14, %s2584_s4  ;;  %p2592_p1 = scmp.lt.u32.totalorder %s2584_s4, %s3209_s28 }
 0x2a5   : > { %p2586_p2 = pnand %p2585_p12, %p1879_p10 }
 0x2a6   : > { %p2591_p9 = por %p2590_p8, %p2589_p3 }
 0x2a7   : > { %p2587_p5 = pneg %p2586_p2 }
 0x2a8   : > { %p2593_p0 = por %p2592_p1, %p2591_p9 }
 0x2aa   : > { %p2594_p7 = pnand %p2593_p0, %p2587_p5 }
 0x2ac   : > { %2597 = shalt.err (!%p2594_p7)
}
 0x2ad   : > { %s2652_s30 = smov 64   ;;  %s2653_s3 = smov 4  }
 0x2ae   : > { %1697 = dma.vmem_to_hbm [thread:$0]  (%p1879_p10), %s3211_s17, %s3198_s6, %s3209_s28, %s1672_s29, %s2652_s30, %s2652_s30, %s2653_s3  }
 0x2af PF: > { %p2447_p4 = scmp.ge.s32.totalorder %s2640_s12, 2  ;;  %s1706_s16 = sand.u32 1, %s2628_s9  }
 0x2b0   : > { %p3274_p6 = scmp.ne.s32.totalorder %s3265_s22, 0  ;;  %s1707_s21 = scalar_lea.sflag [#allocation4], %s1706_s16 }
 0x2b2   : > { %p2441_p11 = pnand %p2447_p4, %p3274_p6 }
 0x2b4   : > { %2623 = dma.done.wait (!%p2441_p11), %s1707_s21, 4416  }
 0x2b5   : > { %2625 = vsyncadd (!%p2441_p11), %s1707_s21, 4294962880  ;;  %p16_p13 = scmp.ge.s32.totalorder %s2694_s15, 6   ;;  %s3275_s9 = smov %s2632_s10 }
 0x2b6   : > { %s3276_s10 = smov %s2636_s11  ;;  %s3277_s11 = smov %s2706_s18 }
 0x2b7   : > { %s3278_s12 = smov %s2694_s15  ;;  %18 = sbr.rel (!%p16_p13) target bundleno = 6 (0x6), region = 77 }
 0x2be   :  { %1712 = vsyncpa [#allocation3], 1 }
 0x2bf   :  { %1714 = vsyncpa [#allocation3 + $0x1], 1 }
 0x2c0   :  { %1715 = vsyncpa [#allocation6], 1 }
 0x2c1   :  { %1716 = vsyncpa [#allocation4], 1 }
 0x2c2   :  { %1718 = vsyncpa [#allocation4 + $0x1], 1 }

</bundles_post_ra>
